<compile_context>
chip_gen: v6e
topology: v6e:2x2x1
jax: 0.10.0
libtpu: 0.0.40
codegen_flags: <defaults>
</compile_context>

<pallas_src>
import math

import jax
import jax.numpy as jnp
import numpy as np
from jax.experimental import pallas as pl
from jax.experimental.pallas import tpu as pltpu

# ---- config (matches a tiny BertConfig) -------------------------------------
BATCH = 2
SEQ = 8
HIDDEN = 32
NUM_HEADS = 4
HEAD_SIZE = HIDDEN // NUM_HEADS
INTERMEDIATE = 64
LN_EPS = 1e-12  # BertLayerNorm variance epsilon

PAD_H = 128   # lane-dense padded hidden width
PAD_I = 128   # lane-dense padded intermediate width


def _gelu(x):
    # original BERT gelu: x * 0.5 * (1 + erf(x / sqrt(2)))
    return x * 0.5 * (1.0 + jax.lax.erf(x * (1.0 / math.sqrt(2.0))))


def _layer_norm_padded(x, gamma, beta, colmask):
    # x is (R, PAD_H) with exact zeros in padded columns; mean/var use the true
    # hidden size as divisor and mask padded columns out of the variance.
    inv_h = 1.0 / HIDDEN
    u = jnp.sum(x, axis=-1, keepdims=True) * inv_h
    d = (x - u) * colmask
    s = jnp.sum(d * d, axis=-1, keepdims=True) * inv_h
    return d * jax.lax.rsqrt(s + LN_EPS) * gamma + beta


def bert_layer_kernel(x_ref, bias_ref, wqkv_ref, bqkv_ref, wao_ref, wi_ref,
                      wo_ref, vecs_ref, out_ref):
    x = x_ref[...]          # (R, PAD_H), zero beyond col HIDDEN
    bias = bias_ref[0]      # (R, R) additive attention bias (mask + batch block-diag)
    vecs = vecs_ref[...]    # (12, PAD_H) packed per-feature vectors

    bao, g1, be1 = vecs[0:1], vecs[1:2], vecs[2:3]
    bi, bo = vecs[3:4], vecs[4:5]
    g2, be2 = vecs[5:6], vecs[6:7]
    colmask = vecs[7:8]                       # 1.0 on the true HIDDEN columns
    head_masks = vecs[8:8 + NUM_HEADS]        # (NH, PAD_H) 0/1 per-head columns

    # --- fused QKV projection: single (R, PAD_H) x (PAD_H, 3*PAD_H) matmul ---
    qkv = jnp.dot(x, wqkv_ref[...], preferred_element_type=jnp.float32) + bqkv_ref[...]
    q = qkv[:, 0 * PAD_H:1 * PAD_H]
    k = qkv[:, 1 * PAD_H:2 * PAD_H]
    v = qkv[:, 2 * PAD_H:3 * PAD_H]

    # --- all heads at once: head axis is the leading batch dim of two batched
    #     matmuls; head selection is a VPU multiply by a 0/1 mask (no slicing).
    hm = head_masks[:, None, :]               # (NH, 1, PAD_H)
    qh = q[None] * hm                         # (NH, R, PAD_H)
    kh = k[None] * hm
    vh = v[None] * hm

    inv_sqrt_d = 1.0 / math.sqrt(HEAD_SIZE)
    scores = jnp.einsum("hqd,hkd->hqk", qh, kh,
                        preferred_element_type=jnp.float32) * inv_sqrt_d
    scores = scores + bias                    # broadcasts over heads
    scores = scores - jnp.max(scores, axis=-1, keepdims=True)
    p = jnp.exp(scores)
    p = p * pl.reciprocal(jnp.sum(p, axis=-1, keepdims=True), approx=True)
    ctx = jnp.einsum("hqk,hkd->hqd", p, vh,
                     preferred_element_type=jnp.float32)   # (NH, R, PAD_H)
    ctx = jnp.sum(ctx, axis=0)                # heads own disjoint columns -> merge

    # --- attention output dense + residual + LayerNorm ---
    attn_out = jnp.dot(ctx, wao_ref[...],
                       preferred_element_type=jnp.float32) + bao
    h1 = _layer_norm_padded(attn_out + x, g1, be1, colmask)

    # --- intermediate dense + GELU ---
    inter = _gelu(jnp.dot(h1, wi_ref[...],
                          preferred_element_type=jnp.float32) + bi)

    # --- output dense + residual + LayerNorm (lane-dense 128-wide store) ---
    out = jnp.dot(inter, wo_ref[...],
                  preferred_element_type=jnp.float32) + bo
    out_ref[...] = _layer_norm_padded(out + h1, g2, be2, colmask)


def _batch_per_step(batch):
    """Batch items folded into one grid step.

    Single-TensorCore chips (v5e/v6e): fold the whole batch (one grid step,
    better sublane fill).  Multi-TC chips (v7x, megacore) keep grid=(B,) so
    'parallel' can shard batch items across cores.
    """
    try:
        kind = jax.devices()[0].device_kind.lower()
    except Exception:
        kind = ""
    single_tc = any(t in kind for t in ("v5 lite", "v5e", "v6 lite", "v6e"))
    return batch if single_tc else 1


def _pad_row(v, width):
    v = jnp.asarray(v, jnp.float32).reshape(1, -1)
    return jnp.zeros((1, width), jnp.float32).at[:, :v.shape[1]].set(v)


def bert_encoder_one_layer(hidden_states, attention_mask, params,
                           output_all_encoded_layers=True):
    """hidden_states: (B,S,H) f32; attention_mask: (B,1,1,S) additive f32."""
    B, S, H = hidden_states.shape
    I = INTERMEDIATE
    f32 = jnp.float32

    BB = _batch_per_step(B)          # batch items per grid step (1 or B)
    G = B // BB                      # grid steps
    R = BB * S                       # rows per step

    # --- activations: flatten batch*seq, zero-pad hidden to 128 lanes ---
    x_flat = hidden_states.reshape(B * S, H).astype(f32)
    x_pad = jnp.zeros((B * S, PAD_H), f32).at[:, :H].set(x_flat)

    # --- fused + zero-padded weights ---
    wqkv = jnp.zeros((PAD_H, 3 * PAD_H), f32)
    wqkv = wqkv.at[:H, 0 * PAD_H:0 * PAD_H + H].set(params["wq"])
    wqkv = wqkv.at[:H, 1 * PAD_H:1 * PAD_H + H].set(params["wk"])
    wqkv = wqkv.at[:H, 2 * PAD_H:2 * PAD_H + H].set(params["wv"])
    bqkv = jnp.zeros((1, 3 * PAD_H), f32)
    bqkv = bqkv.at[:, 0 * PAD_H:0 * PAD_H + H].set(params["bq"])
    bqkv = bqkv.at[:, 1 * PAD_H:1 * PAD_H + H].set(params["bk"])
    bqkv = bqkv.at[:, 2 * PAD_H:2 * PAD_H + H].set(params["bv"])

    wao = jnp.zeros((PAD_H, PAD_H), f32).at[:H, :H].set(params["wao"])
    wi = jnp.zeros((PAD_H, PAD_I), f32).at[:H, :I].set(params["wi"])
    wo = jnp.zeros((PAD_I, PAD_H), f32).at[:I, :H].set(params["wo"])

    # --- pack all per-feature vectors + masks into one (12, 128) array ---
    col_idx = jnp.arange(PAD_H)
    colmask = (col_idx < H).astype(f32).reshape(1, PAD_H)
    head_masks = ((col_idx[None, :] // HEAD_SIZE) ==
                  jnp.arange(NUM_HEADS)[:, None]).astype(f32)  # (NH, 128)
    vecs = jnp.concatenate(
        [_pad_row(params["bao"], PAD_H), _pad_row(params["g1"], PAD_H),
         _pad_row(params["be1"], PAD_H), _pad_row(params["bi"], PAD_H),
         _pad_row(params["bo"], PAD_H), _pad_row(params["g2"], PAD_H),
         _pad_row(params["be2"], PAD_H), colmask, head_masks], axis=0)

    # --- per-step additive attention bias (key mask + cross-batch blocking) ---
    add_mask = attention_mask.reshape(B, S).astype(f32)
    row_batch = jnp.arange(R) // S
    same = row_batch[:, None] == row_batch[None, :]
    blocks = []
    for g in range(G):
        key_bias = add_mask[g * BB:(g + 1) * BB].reshape(R)
        blocks.append(jnp.where(same, key_bias[None, :], jnp.float32(-1e9)))
    bias = jnp.stack(blocks, axis=0)          # (G, R, R)

    def _rep(shape):
        nd = len(shape)
        return pl.BlockSpec(shape, lambda g, _nd=nd: (0,) * _nd)

    out_pad = pl.pallas_call(
        bert_layer_kernel,
        out_shape=jax.ShapeDtypeStruct((B * S, PAD_H), f32),
        grid_spec=pltpu.PrefetchScalarGridSpec(
            num_scalar_prefetch=0,
            grid=(G,),
            in_specs=[
                pl.BlockSpec((R, PAD_H), lambda g: (g, 0)),      # activations
                pl.BlockSpec((1, R, R), lambda g: (g, 0, 0)),    # attn bias
                _rep(wqkv.shape), _rep(bqkv.shape), _rep(wao.shape),
                _rep(wi.shape), _rep(wo.shape), _rep(vecs.shape),
            ],
            out_specs=pl.BlockSpec((R, PAD_H), lambda g: (g, 0)),
        ),
        compiler_params=pltpu.CompilerParams(
            dimension_semantics=("parallel",)),
    )(x_pad, bias, wqkv, bqkv, wao, wi, wo, vecs)

    out = out_pad[:, :H].reshape(B, S, H)
    # Single layer: both output_all_encoded_layers branches produce [out].
    return [out]


# ---- pure-JAX reference (mirrors pytorch_pretrained_bert BertLayer) ----------
def _layer_norm_ref(x, gamma, beta):
    u = jnp.mean(x, axis=-1, keepdims=True)
    d = x - u
    s = jnp.mean(d * d, axis=-1, keepdims=True)
    return d * jax.lax.rsqrt(s + LN_EPS) * gamma + beta


def _reference(hidden_states, attention_mask, p):
    x = hidden_states
    mask = attention_mask  # (B,1,1,S)
    q = x @ p["wq"] + p["bq"]
    k = x @ p["wk"] + p["bk"]
    v = x @ p["wv"] + p["bv"]

    def split_heads(t):
        B, S, H = t.shape
        return t.reshape(B, S, NUM_HEADS, HEAD_SIZE).transpose(0, 2, 1, 3)

    qh, kh, vh = split_heads(q), split_heads(k), split_heads(v)
    scores = jnp.einsum("bhqd,bhkd->bhqk", qh, kh) / math.sqrt(HEAD_SIZE)
    scores = scores + mask
    probs = jax.nn.softmax(scores, axis=-1)
    ctx = jnp.einsum("bhqk,bhkd->bhqd", probs, vh)
    ctx = ctx.transpose(0, 2, 1, 3).reshape(x.shape)

    attn_out = ctx @ p["wao"] + p["bao"]
    h1 = _layer_norm_ref(attn_out + x, p["g1"], p["be1"])
    inter = _gelu(h1 @ p["wi"] + p["bi"])
    out = inter @ p["wo"] + p["bo"]
    return _layer_norm_ref(out + h1, p["g2"], p["be2"])


def _init_params(key):
    keys = jax.random.split(key, 12)
    scale = 0.02

    def w(k, shape):
        return (scale * jax.random.normal(k, shape)).astype(jnp.float32)

    H, I = HIDDEN, INTERMEDIATE
    return {
        # linear weights stored pre-transposed so forward is x @ W + b
        "wq": w(keys[0], (H, H)), "bq": jnp.zeros((1, H), jnp.float32),
        "wk": w(keys[1], (H, H)), "bk": jnp.zeros((1, H), jnp.float32),
        "wv": w(keys[2], (H, H)), "bv": jnp.zeros((1, H), jnp.float32),
        "wao": w(keys[3], (H, H)), "bao": jnp.zeros((1, H), jnp.float32),
        "g1": jnp.ones((1, H), jnp.float32), "be1": jnp.zeros((1, H), jnp.float32),
        "wi": w(keys[4], (H, I)), "bi": jnp.zeros((1, I), jnp.float32),
        "wo": w(keys[5], (I, H)), "bo": jnp.zeros((1, H), jnp.float32),
        "g2": jnp.ones((1, H), jnp.float32), "be2": jnp.zeros((1, H), jnp.float32),
    }
    # TODO(synk): dropout layers in BertSelfAttention/BertSelfOutput/BertOutput
    # are identity at inference and are intentionally omitted.


if __name__ == "__main__":
    key = jax.random.PRNGKey(0)
    k_x, k_m, k_p = jax.random.split(key, 3)

    hidden_states = jax.random.normal(k_x, (BATCH, SEQ, HIDDEN),
                                      dtype=jnp.float32)
    # binary mask -> extended additive mask (B,1,1,S) with 0 / -10000
    keep = (jax.random.uniform(k_m, (BATCH, SEQ)) > 0.2).astype(jnp.float32)
    attention_mask = ((1.0 - keep) * -10000.0).reshape(BATCH, 1, 1, SEQ)

    params = _init_params(k_p)

    layers = bert_encoder_one_layer(hidden_states, attention_mask, params,
                                    output_all_encoded_layers=True)
    out = jax.block_until_ready(layers[-1])

    ref = _reference(hidden_states, attention_mask, params)
    # Tolerance slightly relaxed vs 1e-5 to accommodate the EUP approximate
    # reciprocal used for the softmax denominator (pl.reciprocal approx=True).
    np.testing.assert_allclose(np.asarray(out), np.asarray(ref),
                               rtol=2e-4, atol=2e-4)
    print("KERNEL_OK")
</pallas_src>

<mosaic_0001>
module attributes {stable_mosaic.version = 11 : i64} {
  func.func @bert_layer_kernel(%arg0: i32, %arg1: memref<8x128xf32, #tpu.memory_space<vmem>>, %arg2: memref<1x8x8xf32, #tpu.memory_space<vmem>>, %arg3: memref<128x384xf32, #tpu.memory_space<vmem>>, %arg4: memref<1x384xf32, #tpu.memory_space<vmem>>, %arg5: memref<128x128xf32, #tpu.memory_space<vmem>>, %arg6: memref<128x128xf32, #tpu.memory_space<vmem>>, %arg7: memref<128x128xf32, #tpu.memory_space<vmem>>, %arg8: memref<12x128xf32, #tpu.memory_space<vmem>>, %arg9: memref<8x128xf32, #tpu.memory_space<vmem>>) attributes {dimension_semantics = [#tpu.dimension_semantics<parallel>], iteration_bounds = array<i64: 2>, scalar_prefetch = 0 : i64, scratch_operands = 0 : i64, tpu.core_type = #tpu.core_type<tc>, window_params = [{transform_indices = @transform_0, window_bounds = array<i64: 8, 128>}, {transform_indices = @transform_1, window_bounds = array<i64: 1, 8, 8>}, {pipeline_mode = #tpu.pipeline_mode<synchronous>, transform_indices = @transform_2, window_bounds = array<i64: 128, 384>}, {pipeline_mode = #tpu.pipeline_mode<synchronous>, transform_indices = @transform_3, window_bounds = array<i64: 1, 384>}, {pipeline_mode = #tpu.pipeline_mode<synchronous>, transform_indices = @transform_4, window_bounds = array<i64: 128, 128>}, {pipeline_mode = #tpu.pipeline_mode<synchronous>, transform_indices = @transform_5, window_bounds = array<i64: 128, 128>}, {pipeline_mode = #tpu.pipeline_mode<synchronous>, transform_indices = @transform_6, window_bounds = array<i64: 128, 128>}, {pipeline_mode = #tpu.pipeline_mode<synchronous>, transform_indices = @transform_7, window_bounds = array<i64: 12, 128>}, {transform_indices = @transform_8, window_bounds = array<i64: 8, 128>}]} {
    %c0 = arith.constant 0 : index
    %c0_0 = arith.constant 0 : index
    %0 = vector.load %arg1[%c0, %c0_0] : memref<8x128xf32, #tpu.memory_space<vmem>>, vector<8x128xf32>
    %c0_1 = arith.constant 0 : index
    %c0_2 = arith.constant 0 : index
    %c0_3 = arith.constant 0 : index
    %1 = vector.load %arg2[%c0_1, %c0_2, %c0_3] : memref<1x8x8xf32, #tpu.memory_space<vmem>>, vector<1x8x8xf32>
    %2 = vector.shape_cast %1 : vector<1x8x8xf32> to vector<8x8xf32>
    %c0_4 = arith.constant 0 : index
    %c0_5 = arith.constant 0 : index
    %3 = vector.load %arg8[%c0_4, %c0_5] : memref<12x128xf32, #tpu.memory_space<vmem>>, vector<12x128xf32>
    %4 = vector.extract_strided_slice %3 {offsets = [0, 0], sizes = [1, 128], strides = [1, 1]} : vector<12x128xf32> to vector<1x128xf32>
    %5 = vector.extract_strided_slice %3 {offsets = [1, 0], sizes = [1, 128], strides = [1, 1]} : vector<12x128xf32> to vector<1x128xf32>
    %6 = vector.extract_strided_slice %3 {offsets = [2, 0], sizes = [1, 128], strides = [1, 1]} : vector<12x128xf32> to vector<1x128xf32>
    %7 = vector.extract_strided_slice %3 {offsets = [3, 0], sizes = [1, 128], strides = [1, 1]} : vector<12x128xf32> to vector<1x128xf32>
    %8 = vector.extract_strided_slice %3 {offsets = [4, 0], sizes = [1, 128], strides = [1, 1]} : vector<12x128xf32> to vector<1x128xf32>
    %9 = vector.extract_strided_slice %3 {offsets = [5, 0], sizes = [1, 128], strides = [1, 1]} : vector<12x128xf32> to vector<1x128xf32>
    %10 = vector.extract_strided_slice %3 {offsets = [6, 0], sizes = [1, 128], strides = [1, 1]} : vector<12x128xf32> to vector<1x128xf32>
    %11 = vector.extract_strided_slice %3 {offsets = [7, 0], sizes = [1, 128], strides = [1, 1]} : vector<12x128xf32> to vector<1x128xf32>
    %12 = vector.extract_strided_slice %3 {offsets = [8, 0], sizes = [4, 128], strides = [1, 1]} : vector<12x128xf32> to vector<4x128xf32>
    %c0_6 = arith.constant 0 : index
    %c0_7 = arith.constant 0 : index
    %13 = vector.load %arg3[%c0_6, %c0_7] : memref<128x384xf32, #tpu.memory_space<vmem>>, vector<128x384xf32>
    %cst = arith.constant dense<0.000000e+00> : vector<8x384xf32>
    %14 = tpu.matmul %0, %13, %cst {dimension_numbers = #tpu.dot_dimension_numbers<[1], [0], [0], [1], [0, 0, 1, 1], [], []>} : vector<8x128xf32>, vector<128x384xf32>, vector<8x384xf32> -> vector<8x384xf32>
    %c0_8 = arith.constant 0 : index
    %c0_9 = arith.constant 0 : index
    %15 = vector.load %arg4[%c0_8, %c0_9] : memref<1x384xf32, #tpu.memory_space<vmem>>, vector<1x384xf32>
    %16 = vector.broadcast %15 : vector<1x384xf32> to vector<8x384xf32>
    %17 = arith.addf %14, %16 : vector<8x384xf32>
    %18 = vector.extract_strided_slice %17 {offsets = [0, 0], sizes = [8, 128], strides = [1, 1]} : vector<8x384xf32> to vector<8x128xf32>
    %19 = vector.extract_strided_slice %17 {offsets = [0, 128], sizes = [8, 128], strides = [1, 1]} : vector<8x384xf32> to vector<8x128xf32>
    %20 = vector.extract_strided_slice %17 {offsets = [0, 256], sizes = [8, 128], strides = [1, 1]} : vector<8x384xf32> to vector<8x128xf32>
    %21 = vector.shape_cast %12 : vector<4x128xf32> to vector<4x1x128xf32>
    %22 = vector.shape_cast %18 : vector<8x128xf32> to vector<1x8x128xf32>
    %23 = vector.broadcast %22 : vector<1x8x128xf32> to vector<4x8x128xf32>
    %24 = vector.broadcast %21 : vector<4x1x128xf32> to vector<4x8x128xf32>
    %25 = arith.mulf %23, %24 : vector<4x8x128xf32>
    %26 = vector.shape_cast %19 : vector<8x128xf32> to vector<1x8x128xf32>
    %27 = vector.broadcast %26 : vector<1x8x128xf32> to vector<4x8x128xf32>
    %28 = vector.broadcast %21 : vector<4x1x128xf32> to vector<4x8x128xf32>
    %29 = arith.mulf %27, %28 : vector<4x8x128xf32>
    %30 = vector.shape_cast %20 : vector<8x128xf32> to vector<1x8x128xf32>
    %31 = vector.broadcast %30 : vector<1x8x128xf32> to vector<4x8x128xf32>
    %32 = vector.broadcast %21 : vector<4x1x128xf32> to vector<4x8x128xf32>
    %33 = arith.mulf %31, %32 : vector<4x8x128xf32>
    "tpu.trace_start"() <{level = 10 : i32, message = "hqd,hkd->hqk"}> : () -> ()
    %cst_10 = arith.constant dense<0.000000e+00> : vector<4x8x8xf32>
    %34 = tpu.matmul %25, %29, %cst_10 {dimension_numbers = #tpu.dot_dimension_numbers<[2], [2], [1], [1], [0, 0, 0, 1, 1, 1], [0], [0]>} : vector<4x8x128xf32>, vector<4x8x128xf32>, vector<4x8x8xf32> -> vector<4x8x8xf32>
    "tpu.trace_stop"() : () -> ()
    %cst_11 = arith.constant 0.353553385 : f32
    %35 = vector.broadcast %cst_11 : f32 to vector<4x8x8xf32>
    %36 = arith.mulf %34, %35 : vector<4x8x8xf32>
    %37 = vector.shape_cast %2 : vector<8x8xf32> to vector<1x8x8xf32>
    %38 = vector.broadcast %37 : vector<1x8x8xf32> to vector<4x8x8xf32>
    %39 = arith.addf %36, %38 : vector<4x8x8xf32>
    %cst_12 = arith.constant dense<0xFF800000> : vector<4x8xf32>
    %40 = vector.multi_reduction <maximumf>, %39, %cst_12 [2] : vector<4x8x8xf32> to vector<4x8xf32>
    %41 = vector.shape_cast %40 : vector<4x8xf32> to vector<4x8x1xf32>
    %42 = vector.broadcast %41 : vector<4x8x1xf32> to vector<4x8x8xf32>
    %43 = arith.subf %39, %42 : vector<4x8x8xf32>
    %44 = math.exp %43 : vector<4x8x8xf32>
    %cst_13 = arith.constant dense<0.000000e+00> : vector<4x8xf32>
    %45 = vector.multi_reduction <add>, %44, %cst_13 [2] : vector<4x8x8xf32> to vector<4x8xf32>
    %46 = vector.shape_cast %45 : vector<4x8xf32> to vector<4x8x1xf32>
    %47 = tpu.reciprocal %46 {approx = true} : vector<4x8x1xf32> -> vector<4x8x1xf32>
    %48 = vector.broadcast %47 : vector<4x8x1xf32> to vector<4x8x8xf32>
    %49 = arith.mulf %44, %48 : vector<4x8x8xf32>
    "tpu.trace_start"() <{level = 10 : i32, message = "hqk,hkd->hqd"}> : () -> ()
    %cst_14 = arith.constant dense<0.000000e+00> : vector<4x8x128xf32>
    %50 = tpu.matmul %49, %33, %cst_14 {dimension_numbers = #tpu.dot_dimension_numbers<[2], [1], [1], [2], [0, 0, 0, 1, 1, 2], [0], [0]>} : vector<4x8x8xf32>, vector<4x8x128xf32>, vector<4x8x128xf32> -> vector<4x8x128xf32>
    "tpu.trace_stop"() : () -> ()
    %cst_15 = arith.constant dense<0.000000e+00> : vector<8x128xf32>
    %51 = vector.multi_reduction <add>, %50, %cst_15 [0] : vector<4x8x128xf32> to vector<8x128xf32>
    %c0_16 = arith.constant 0 : index
    %c0_17 = arith.constant 0 : index
    %52 = vector.load %arg5[%c0_16, %c0_17] : memref<128x128xf32, #tpu.memory_space<vmem>>, vector<128x128xf32>
    %cst_18 = arith.constant dense<0.000000e+00> : vector<8x128xf32>
    %53 = tpu.matmul %51, %52, %cst_18 {dimension_numbers = #tpu.dot_dimension_numbers<[1], [0], [0], [1], [0, 0, 1, 1], [], []>} : vector<8x128xf32>, vector<128x128xf32>, vector<8x128xf32> -> vector<8x128xf32>
    %54 = vector.broadcast %4 : vector<1x128xf32> to vector<8x128xf32>
    %55 = arith.addf %53, %54 : vector<8x128xf32>
    %56 = arith.addf %55, %0 : vector<8x128xf32>
    %cst_19 = arith.constant dense<0.000000e+00> : vector<8xf32>
    %57 = vector.multi_reduction <add>, %56, %cst_19 [1] : vector<8x128xf32> to vector<8xf32>
    %58 = vector.shape_cast %57 : vector<8xf32> to vector<8x1xf32>
    %cst_20 = arith.constant 3.125000e-02 : f32
    %59 = vector.broadcast %cst_20 : f32 to vector<8x1xf32>
    %60 = arith.mulf %58, %59 : vector<8x1xf32>
    %61 = vector.broadcast %60 : vector<8x1xf32> to vector<8x128xf32>
    %62 = arith.subf %56, %61 : vector<8x128xf32>
    %63 = vector.broadcast %11 : vector<1x128xf32> to vector<8x128xf32>
    %64 = arith.mulf %62, %63 : vector<8x128xf32>
    %65 = arith.mulf %64, %64 : vector<8x128xf32>
    %cst_21 = arith.constant dense<0.000000e+00> : vector<8xf32>
    %66 = vector.multi_reduction <add>, %65, %cst_21 [1] : vector<8x128xf32> to vector<8xf32>
    %67 = vector.shape_cast %66 : vector<8xf32> to vector<8x1xf32>
    %cst_22 = arith.constant 3.125000e-02 : f32
    %68 = vector.broadcast %cst_22 : f32 to vector<8x1xf32>
    %69 = arith.mulf %67, %68 : vector<8x1xf32>
    %cst_23 = arith.constant 9.99999996E-13 : f32
    %70 = vector.broadcast %cst_23 : f32 to vector<8x1xf32>
    %71 = arith.addf %69, %70 : vector<8x1xf32>
    %72 = math.rsqrt %71 : vector<8x1xf32>
    %73 = vector.broadcast %72 : vector<8x1xf32> to vector<8x128xf32>
    %74 = arith.mulf %64, %73 : vector<8x128xf32>
    %75 = vector.broadcast %5 : vector<1x128xf32> to vector<8x128xf32>
    %76 = arith.mulf %74, %75 : vector<8x128xf32>
    %77 = vector.broadcast %6 : vector<1x128xf32> to vector<8x128xf32>
    %78 = arith.addf %76, %77 : vector<8x128xf32>
    %c0_24 = arith.constant 0 : index
    %c0_25 = arith.constant 0 : index
    %79 = vector.load %arg6[%c0_24, %c0_25] : memref<128x128xf32, #tpu.memory_space<vmem>>, vector<128x128xf32>
    %cst_26 = arith.constant dense<0.000000e+00> : vector<8x128xf32>
    %80 = tpu.matmul %78, %79, %cst_26 {dimension_numbers = #tpu.dot_dimension_numbers<[1], [0], [0], [1], [0, 0, 1, 1], [], []>} : vector<8x128xf32>, vector<128x128xf32>, vector<8x128xf32> -> vector<8x128xf32>
    %81 = vector.broadcast %7 : vector<1x128xf32> to vector<8x128xf32>
    %82 = arith.addf %80, %81 : vector<8x128xf32>
    %cst_27 = arith.constant 5.000000e-01 : f32
    %83 = vector.broadcast %cst_27 : f32 to vector<8x128xf32>
    %84 = arith.mulf %82, %83 : vector<8x128xf32>
    %cst_28 = arith.constant 0.707106769 : f32
    %85 = vector.broadcast %cst_28 : f32 to vector<8x128xf32>
    %86 = arith.mulf %82, %85 : vector<8x128xf32>
    %87 = math.erf %86 : vector<8x128xf32>
    %cst_29 = arith.constant 1.000000e+00 : f32
    %88 = vector.broadcast %cst_29 : f32 to vector<8x128xf32>
    %89 = arith.addf %88, %87 : vector<8x128xf32>
    %90 = arith.mulf %84, %89 : vector<8x128xf32>
    %c0_30 = arith.constant 0 : index
    %c0_31 = arith.constant 0 : index
    %91 = vector.load %arg7[%c0_30, %c0_31] : memref<128x128xf32, #tpu.memory_space<vmem>>, vector<128x128xf32>
    %cst_32 = arith.constant dense<0.000000e+00> : vector<8x128xf32>
    %92 = tpu.matmul %90, %91, %cst_32 {dimension_numbers = #tpu.dot_dimension_numbers<[1], [0], [0], [1], [0, 0, 1, 1], [], []>} : vector<8x128xf32>, vector<128x128xf32>, vector<8x128xf32> -> vector<8x128xf32>
    %93 = vector.broadcast %8 : vector<1x128xf32> to vector<8x128xf32>
    %94 = arith.addf %92, %93 : vector<8x128xf32>
    %95 = arith.addf %94, %78 : vector<8x128xf32>
    %cst_33 = arith.constant dense<0.000000e+00> : vector<8xf32>
    %96 = vector.multi_reduction <add>, %95, %cst_33 [1] : vector<8x128xf32> to vector<8xf32>
    %97 = vector.shape_cast %96 : vector<8xf32> to vector<8x1xf32>
    %cst_34 = arith.constant 3.125000e-02 : f32
    %98 = vector.broadcast %cst_34 : f32 to vector<8x1xf32>
    %99 = arith.mulf %97, %98 : vector<8x1xf32>
    %100 = vector.broadcast %99 : vector<8x1xf32> to vector<8x128xf32>
    %101 = arith.subf %95, %100 : vector<8x128xf32>
    %102 = vector.broadcast %11 : vector<1x128xf32> to vector<8x128xf32>
    %103 = arith.mulf %101, %102 : vector<8x128xf32>
    %104 = arith.mulf %103, %103 : vector<8x128xf32>
    %cst_35 = arith.constant dense<0.000000e+00> : vector<8xf32>
    %105 = vector.multi_reduction <add>, %104, %cst_35 [1] : vector<8x128xf32> to vector<8xf32>
    %106 = vector.shape_cast %105 : vector<8xf32> to vector<8x1xf32>
    %cst_36 = arith.constant 3.125000e-02 : f32
    %107 = vector.broadcast %cst_36 : f32 to vector<8x1xf32>
    %108 = arith.mulf %106, %107 : vector<8x1xf32>
    %cst_37 = arith.constant 9.99999996E-13 : f32
    %109 = vector.broadcast %cst_37 : f32 to vector<8x1xf32>
    %110 = arith.addf %108, %109 : vector<8x1xf32>
    %111 = math.rsqrt %110 : vector<8x1xf32>
    %112 = vector.broadcast %111 : vector<8x1xf32> to vector<8x128xf32>
    %113 = arith.mulf %103, %112 : vector<8x128xf32>
    %114 = vector.broadcast %9 : vector<1x128xf32> to vector<8x128xf32>
    %115 = arith.mulf %113, %114 : vector<8x128xf32>
    %116 = vector.broadcast %10 : vector<1x128xf32> to vector<8x128xf32>
    %117 = arith.addf %115, %116 : vector<8x128xf32>
    %c0_38 = arith.constant 0 : index
    %c0_39 = arith.constant 0 : index
    %118 = vector.load %arg9[%c0_38, %c0_39] : memref<8x128xf32, #tpu.memory_space<vmem>>, vector<8x128xf32>
    tpu.vector_store %arg9[%c0_38, %c0_39], %117 {strides = array<i32>} : memref<8x128xf32, #tpu.memory_space<vmem>>, vector<8x128xf32>,
    return
  }
  func.func @transform_0(%arg0: i32) -> (i32, i32) {
    %c0_i32 = arith.constant 0 : i32
    %c0_i32_0 = arith.constant 0 : i32
    return %arg0, %c0_i32 : i32, i32
  }
  func.func @transform_1(%arg0: i32) -> (i32, i32, i32) {
    %c0_i32 = arith.constant 0 : i32
    %c0_i32_0 = arith.constant 0 : i32
    %c0_i32_1 = arith.constant 0 : i32
    return %arg0, %c0_i32, %c0_i32_0 : i32, i32, i32
  }
  func.func @transform_2(%arg0: i32) -> (i32, i32) {
    %c0_i32 = arith.constant 0 : i32
    %c0_i32_0 = arith.constant 0 : i32
    %c0_i32_1 = arith.constant 0 : i32
    return %c0_i32, %c0_i32_0 : i32, i32
  }
  func.func @transform_3(%arg0: i32) -> (i32, i32) {
    %c0_i32 = arith.constant 0 : i32
    %c0_i32_0 = arith.constant 0 : i32
    %c0_i32_1 = arith.constant 0 : i32
    return %c0_i32, %c0_i32_0 : i32, i32
  }
  func.func @transform_4(%arg0: i32) -> (i32, i32) {
    %c0_i32 = arith.constant 0 : i32
    %c0_i32_0 = arith.constant 0 : i32
    %c0_i32_1 = arith.constant 0 : i32
    return %c0_i32, %c0_i32_0 : i32, i32
  }
  func.func @transform_5(%arg0: i32) -> (i32, i32) {
    %c0_i32 = arith.constant 0 : i32
    %c0_i32_0 = arith.constant 0 : i32
    %c0_i32_1 = arith.constant 0 : i32
    return %c0_i32, %c0_i32_0 : i32, i32
  }
  func.func @transform_6(%arg0: i32) -> (i32, i32) {
    %c0_i32 = arith.constant 0 : i32
    %c0_i32_0 = arith.constant 0 : i32
    %c0_i32_1 = arith.constant 0 : i32
    return %c0_i32, %c0_i32_0 : i32, i32
  }
  func.func @transform_7(%arg0: i32) -> (i32, i32) {
    %c0_i32 = arith.constant 0 : i32
    %c0_i32_0 = arith.constant 0 : i32
    %c0_i32_1 = arith.constant 0 : i32
    return %c0_i32, %c0_i32_0 : i32, i32
  }
  func.func @transform_8(%arg0: i32) -> (i32, i32) {
    %c0_i32 = arith.constant 0 : i32
    %c0_i32_0 = arith.constant 0 : i32
    return %arg0, %c0_i32 : i32, i32
  }
}

</mosaic_0001>

<bundles_post_ra>
// kernel: tpu_custom_call.1
= control target key start
LH: loop header
LB: loop body
LE: loop exit
PB: predicated region body
PF: predicated region fallthrough
CT: control target
= control target key end

     0   :  { %s3001_s0 = inlined_call_operand.hbm [shape: f32[16,128], index: 0, kind: input, shape index: {}]   ;;  %s3002_s1 = inlined_call_operand.hbm [shape: f32[2,8,8], index: 1, kind: input, shape index: {}]   ;;  %s3003_s2 = inlined_call_operand.hbm [shape: f32[128,384], index: 2, kind: input, shape index: {}]   ;;  %s3004_s3 = inlined_call_operand.vmem [shape: f32[1,384], index: 3, kind: input, shape index: {}]   ;;  %s3005_s4 = inlined_call_operand.hbm [shape: f32[128,128], index: 4, kind: input, shape index: {}]   ;;  %s3006_s5 = inlined_call_operand.hbm [shape: f32[128,128], index: 5, kind: input, shape index: {}]   ;;  %s3007_s6 = inlined_call_operand.hbm [shape: f32[128,128], index: 6, kind: input, shape index: {}]   ;;  %s3008_s7 = inlined_call_operand.hbm [shape: f32[12,128], index: 7, kind: input, shape index: {}]   ;;  %s3009_s8 = inlined_call_operand.hbm [shape: f32[16,128], index: 8, kind: output, shape index: {}]  }
   0x1   :  { %3014 = sst [smem:[#allocation21_spill]] %s3003_s2 }
   0x2   :  { %3015 = sst [smem:[#allocation22_spill]] %s3005_s4 }
   0x3   :  { %3016 = sst [smem:[#allocation23_spill]] %s3006_s5 }
   0x4   :  { %3017 = sst [smem:[#allocation24_spill]] %s3007_s6 }
   0x5   :  { %3018 = sst [smem:[#allocation25_spill]] %s3008_s7 }
   0x6   :  { %13 = vsyncpa [#allocation3], 0 }
   0x7   :  { %15 = vsyncpa [#allocation3 + $0x1], 0 }
   0x8   :  { %16 = vsyncpa [#allocation6], 0 }
   0x9   :  { %18 = vsyncpa [#allocation6 + $0x1], 0 }
   0xa   :  { %19 = vsyncpa [#allocation9], 0 }
   0xb   :  { %20 = vsyncpa [#allocation12], 0 }
   0xc   :  { %21 = vsyncpa [#allocation4], 0 }
   0xd   :  { %23 = vsyncpa [#allocation4 + $0x1], 0  ;;  %s2558_s27 = smov 0   ;;  %s2560_s28 = smov 0  }
   0xe   :  { %s2562_s29 = smov 0   ;;  %s2564_s30 = smov 0  }
   0xf LB: > { %s2498_s9 = smov [#allocation7]   ;;  %s2579_s11 = sadd.s32 4294967295, %s2496_s30   ;;  %s2496_s30 = sphi %s2564_s30, %s3045_s30   ;;  %s2492_s29 = sphi %s2562_s29, %s3044_s29   ;;  %s2488_s28 = sphi %s2560_s28, %s3043_s28   ;;  %s2484_s27 = sphi %s2558_s27, %s3042_s27  }
  0x10   : > { %s250_s10 = sshll.u32 %s2498_s9, 4  ;;  %p1806_p0 = scmp.ge.s32.totalorder %s2496_s30, 1  ;;  %s251_s10 = int_to_ptr.vmem [resolvable:$true] %s250_s10 }
  0x11   : > { %p3010_p1 = scmp.eq.s32.totalorder %s2579_s11, 0  ;;  %p238_p2 = scmp.lt.s32.totalorder %s2496_s30, 3 }
  0x12   : > { %s2499_s13 = smov [#allocation8]   ;;  %s2500_s16 = smov [#allocation11]  }
  0x13   : > { %p2584_p3 = pnand %p1806_p0, %p238_p2  ;;  %s266_s14 = sshll.u32 %s2499_s13, 4  ;;  %s2597_s14 = int_to_ptr.vmem [resolvable:$true] %s266_s14 }
  0x14   : > { %s2599_s17 = sshll.u32 %s2500_s16, 4  ;;  %s2241_s19 = scalar_lea.vmem %s251_s10, 6144  ;;  %s293_s17 = int_to_ptr.vmem [resolvable:$true] %s2599_s17 }
  0x15   : > { %s3019_s12 = scalar_select %p2584_p3, 1, 0 }
  0x16   : > { %p2125_p5 = pneg %p2584_p3  ;;  %p2242_p8 = scmp.ne.s32.totalorder %s251_s10, %s2241_s19 }
  0x17   : > { %p2249_p11 = scmp.lt.s32.totalorder %s251_s10, %s251_s10  ;;  %p2250_p12 = scmp.lt.s32.totalorder %s2241_s19, %s2241_s19 }
  0x18   : > { %p2593_p6 = pnand %p2125_p5, %p3010_p1 }
  0x19   : > { %p2251_p13 = por %p2250_p12, %p2249_p11 }
  0x1a   : > { %p2603_p7 = pneg %p2593_p6 }
  0x1c   : > { %p2244_p9 = pnand %p2242_p8, %p2603_p7 }
  0x1e   : > { %p2245_p10 = pneg %p2244_p9 }
  0x20   : > { %p2252_p0 = pnand %p2251_p13, %p2245_p10 }
  0x22   : > { %2255 = shalt.err (!%p2252_p0)
}
  0x23   : > { %s2501_s20 = smov 384   ;;  %s2502_s21 = smov 24  }
  0x24   : > { %s3022_s2 = sld [smem:[#allocation21_spill]]  ;;  %s2267_s24 = scalar_lea.vmem %s2597_s14, 2048 }
  0x25   : > { %p2268_p2 = scmp.ne.s32.totalorder %s2597_s14, %s2267_s24  ;;  %p2275_p9 = scmp.lt.s32.totalorder %s2597_s14, %s2597_s14 }
  0x26   : > { %p2276_p10 = scmp.lt.s32.totalorder %s2267_s24, %s2267_s24 }
  0x27   : > { %p2270_p5 = pnand %p2268_p2, %p2603_p7 }
  0x28   : > { %p2277_p11 = por %p2276_p10, %p2275_p9 }
  0x29   : > { %p2271_p8 = pneg %p2270_p5 }
  0x2a   : > { %2128 = dma.hbm_to_vmem [thread:$0]  (!%p2593_p6), %s3022_s2, 6144, %s251_s10, [#allocation6], %s2501_s20, %s2501_s20, %s2502_s21  }
  0x2b   : > { %p2278_p12 = pnand %p2277_p11, %p2271_p8 }
  0x2d   : > { %2281 = shalt.err (!%p2278_p12)
}
  0x2e   : > { %s2503_s25 = smov 128   ;;  %s2504_s26 = smov 8  }
  0x2f   : > { %s3023_s4 = sld [smem:[#allocation22_spill]]  ;;  %s2293_s13 = scalar_lea.vmem %s293_s17, 2048 }
  0x30   : > { %p2294_p13 = scmp.ne.s32.totalorder %s293_s17, %s2293_s13  ;;  %p2301_p5 = scmp.lt.s32.totalorder %s293_s17, %s293_s17 }
  0x31   : > { %p2302_p8 = scmp.lt.s32.totalorder %s2293_s13, %s2293_s13 }
  0x32   : > { %p2296_p0 = pnand %p2294_p13, %p2603_p7 }
  0x33   : > { %p2303_p9 = por %p2302_p8, %p2301_p5 }
  0x34   : > { %p2297_p2 = pneg %p2296_p0 }
  0x35   : > { %2131 = dma.hbm_to_vmem [thread:$0]  (!%p2593_p6), %s3023_s4, 2048, %s2597_s14, [#allocation9], %s2503_s25, %s2503_s25, %s2504_s26  }
  0x36   : > { %p2304_p10 = pnand %p2303_p9, %p2297_p2 }
  0x38   : > { %2307 = shalt.err (!%p2304_p10)
}
  0x39   : > { %s3024_s6 = sld [smem:[#allocation24_spill]]  ;;  %s2505_s14 = smov [#allocation10]  }
  0x3a   : > { %s279_s20 = sshll.u32 %s2505_s14, 4  ;;  %s2506_s21 = smov [#allocation13]   ;;  %s280_s20 = int_to_ptr.vmem [resolvable:$true] %s279_s20 }
  0x3b   : > { %s305_s22 = sshll.u32 %s2506_s21, 4  ;;  %s2319_s23 = scalar_lea.vmem %s280_s20, 2048  ;;  %s306_s22 = int_to_ptr.vmem [resolvable:$true] %s305_s22 }
  0x3c   : > { %p2320_p11 = scmp.ne.s32.totalorder %s280_s20, %s2319_s23  ;;  %p2327_p0 = scmp.lt.s32.totalorder %s280_s20, %s280_s20 }
  0x3d   : > { %p2328_p2 = scmp.lt.s32.totalorder %s2319_s23, %s2319_s23 }
  0x3e   : > { %p2322_p12 = pnand %p2320_p11, %p2603_p7 }
  0x3f   : > { %2137 = dma.hbm_to_vmem [thread:$0]  (!%p2593_p6), %s3024_s6, 2048, %s293_s17, [#allocation12], %s2503_s25, %s2503_s25, %s2504_s26  }
  0x40   : > { %p2323_p13 = pneg %p2322_p12  ;;  %p2329_p5 = por %p2328_p2, %p2327_p0 }
  0x42   : > { %p2330_p8 = pnand %p2329_p5, %p2323_p13 }
  0x44   : > { %2333 = shalt.err (!%p2330_p8)
}
  0x45   : > { %s3025_s5 = sld [smem:[#allocation23_spill]]  ;;  %s2345_s9 = scalar_lea.vmem %s306_s22, 256 }
  0x46   : > { %p2346_p9 = scmp.ne.s32.totalorder %s306_s22, %s2345_s9  ;;  %p2353_p12 = scmp.lt.s32.totalorder %s306_s22, %s306_s22 }
  0x47   : > { %p2354_p0 = scmp.lt.s32.totalorder %s2345_s9, %s2345_s9 }
  0x48   : > { %p2348_p10 = pnand %p2346_p9, %p2603_p7 }
  0x49   : > { %p2355_p13 = por %p2354_p0, %p2353_p12 }
  0x4a   : > { %p2349_p11 = pneg %p2348_p10 }
  0x4b   : > { %2134 = dma.hbm_to_vmem [thread:$0]  (!%p2593_p6), %s3025_s5, 2048, %s280_s20, [#allocation9], %s2503_s25, %s2503_s25, %s2504_s26  }
  0x4c   : > { %p2356_p2 = pnand %p2355_p13, %p2349_p11 }
  0x4e   : > { %2359 = shalt.err (!%p2356_p2)
}
  0x4f   : > { %s3026_s7 = sld [smem:[#allocation25_spill]]  ;;  %s1805_s15 = sadd.s32 4294967294, %s2496_s30  }
  0x50   : > { %s2662_s18 = sadd.s32 1, %s2496_s30   ;;  %s36_s16 = sadd.s32 1, %s2492_s29 }
  0x51   : > { %s33_s19 = ssub.s32 %s2496_s30, %s2662_s18  ;;  %p43_p7 = scmp.ne.s32.totalorder %s2492_s29, %s2488_s28 }
  0x52   : > { %p34_p5 = scmp.eq.s32.totalorder %s33_s19, 0  ;;  %p44_p8 = scmp.eq.s32.totalorder %s2496_s30, 0 }
  0x53   : > { %p49_p9 = scmp.ne.s32.totalorder %s2488_s28, %s2484_s27  ;;  %p225_p10 = scmp.eq.s32.totalorder %s2579_s11, 1 }
  0x54   : > { %s2674_s14 = scalar_select %p34_p5, %s2492_s29, %s36_s16  }
  0x55   : > { %2140 = dma.hbm_to_vmem [thread:$0]  (!%p2593_p6), %s3026_s7, 256, %s306_s22, [#allocation12], %s2503_s25, %s2503_s25, %s2504_s26  }
  0x56   : > { %p45_p11 = por %p44_p8, %p43_p7  ;;  %p2678_p12 = por %p3010_p1, %p49_p9 }
  0x57   : > { %p2682_p6 = por %p225_p10, %p43_p7  ;;  %p231_p0 = scmp.eq.s32.totalorder %s1805_s15, 1 }
  0x58   : > { %s3027_s20 = scalar_select %p2678_p12, 1, 0 }
  0x59   : > { %s3028_s25 = scalar_select %p2682_p6, 1, 0 }
  0x5a   : > { %p2157_p13 = scmp.lt.s32.totalorder %s2496_s30, 2  ;;  %s319_s26 = sand.u32 1, %s2492_s29  }
  0x5b   : > { %p2688_p2 = por %p231_p0, %p49_p9  ;;  %s2692_s22 = sshll.u32 %s319_s26, 3 }
  0x5c   : > { %s1814_s23 = sshll.u32 %s2496_s30, 7  ;;  %s323_s10 = scalar_lea.vmem [#allocation2], %s2692_s22 }
  0x5d   : > { %s3029_s21 = scalar_select %p2688_p2, 1, 0 }
  0x5e   : > { %s2698_s9 = scalar_lea.hbm %s3001_s0, %s1814_s23  ;;  %s330_s13 = sshll.u32 %s323_s10, 4  ;;  %s331_s13 = int_to_ptr.vmem [resolvable:$true] %s330_s13 }
  0x5f   : > { %p2701_p7 = pnand %p2157_p13, %p45_p11  ;;  %s2708_s2 = scalar_lea.hbm %s3002_s1, %s1814_s23 }
  0x60   : > { %s320_s17 = scalar_lea.sflag [#allocation3], %s319_s26  ;;  %s2360_s24 = scalar_lea.hbm %s2698_s9, 128 }
  0x61   : > { %p2361_p5 = scmp.ne.s32.totalorder %s2698_s9, %s2360_s24  ;;  %p2362_p8 = pneg %p2701_p7 }
  0x62   : > { %s2365_s5 = scalar_lea.hbm %s3001_s0, 256  ;;  %p2366_p11 = scmp.lt.s32.totalorder %s2698_s9, %s3001_s0 }
  0x63   : > { %p2363_p9 = pnand %p2362_p8, %p2361_p5  ;;  %p2367_p0 = scmp.lt.s32.totalorder %s2365_s5, %s2360_s24 }
  0x65   : > { %p2364_p10 = pneg %p2363_p9  ;;  %p2368_p13 = por %p2367_p0, %p2366_p11 }
  0x67   : > { %p2369_p4 = pnand %p2368_p13, %p2364_p10 }
  0x69   : > { %2372 = shalt.err (!%p2369_p4)
}
  0x6a   : > { %s2373_s26 = scalar_lea.vmem %s331_s13, 128  ;;  %s2507_s23 = smov [#allocation2]  }
  0x6b   : > { %p2374_p1 = scmp.ne.s32.totalorder %s331_s13, %s2373_s26  ;;  %s2378_s16 = sshll.u32 %s2507_s23, 4  ;;  %s2379_s16 = int_to_ptr.vmem [resolvable:$false] %s2378_s16 }
  0x6c   : > { %s2380_s4 = scalar_lea.vmem %s2379_s16, 256  ;;  %p2381_p9 = scmp.lt.s32.totalorder %s331_s13, %s2379_s16 }
  0x6d   : > { %p2376_p2 = pnand %p2374_p1, %p2362_p8  ;;  %p2382_p6 = scmp.lt.s32.totalorder %s2380_s4, %s2373_s26 }
  0x6f   : > { %p2377_p5 = pneg %p2376_p2  ;;  %p2383_p12 = por %p2382_p6, %p2381_p9 }
  0x71   : > { %p2384_p3 = pnand %p2383_p12, %p2377_p5 }
  0x73   : > { %2387 = shalt.err (!%p2384_p3)
}
  0x74   : > { %2144 = dma.hbm_to_vmem [thread:$0]  (!%p2701_p7), %s2698_s9, 128, %s331_s13, %s320_s17  }
  0x75   : > { %s337_s5 = sand.u32 1, %s2496_s30   ;;  %s341_s6 = scalar_lea.vmem [#allocation5], %s2692_s22 }
  0x76   : > { %s348_s7 = sshll.u32 %s341_s6, 4  ;;  %s338_s19 = scalar_lea.sflag [#allocation6], %s337_s5  ;;  %s349_s7 = int_to_ptr.vmem [resolvable:$true] %s348_s7 }
  0x77   : > { %s2388_s24 = scalar_lea.hbm %s2708_s2, 128  ;;  %s2393_s23 = scalar_lea.hbm %s3002_s1, 256 }
  0x78   : > { %p2389_p1 = scmp.ne.s32.totalorder %s2708_s2, %s2388_s24  ;;  %p2394_p12 = scmp.lt.s32.totalorder %s2708_s2, %s3002_s1 }
  0x79   : > { %p2395_p6 = scmp.lt.s32.totalorder %s2393_s23, %s2388_s24 }
  0x7a   : > { %p2391_p3 = pnand %p2389_p1, %p2362_p8 }
  0x7b   : > { %p2396_p2 = por %p2395_p6, %p2394_p12 }
  0x7c   : > { %p2392_p4 = pneg %p2391_p3 }
  0x7e   : > { %p2397_p10 = pnand %p2396_p2, %p2392_p4 }
  0x80   : > { %2400 = shalt.err (!%p2397_p10)
}
  0x81   : > { %s2401_s22 = scalar_lea.vmem %s349_s7, 128  ;;  %s2508_s9 = smov [#allocation5]  }
  0x82   : > { %p2402_p11 = scmp.ne.s32.totalorder %s349_s7, %s2401_s22  ;;  %s2406_s13 = sshll.u32 %s2508_s9, 4  ;;  %s2407_s13 = int_to_ptr.vmem [resolvable:$false] %s2406_s13 }
  0x83   : > { %s2408_s17 = scalar_lea.vmem %s2407_s13, 256  ;;  %p2409_p5 = scmp.lt.s32.totalorder %s349_s7, %s2407_s13 }
  0x84   : > { %p2404_p0 = pnand %p2402_p11, %p2362_p8  ;;  %p2410_p9 = scmp.lt.s32.totalorder %s2408_s17, %s2401_s22 }
  0x86   : > { %p2405_p13 = pneg %p2404_p0  ;;  %p2411_p1 = por %p2410_p9, %p2409_p5 }
  0x88   : > { %p2412_p3 = pnand %p2411_p1, %p2405_p13 }
  0x8a   : > { %2415 = shalt.err (!%p2412_p3)
}
  0x8b   : > { %2147 = dma.hbm_to_vmem [thread:$0]  (!%p2701_p7), %s2708_s2, 128, %s349_s7, %s338_s19  }
  0x8c   : > { %p3031_p4 = scmp.ne.s32.totalorder %s3019_s12, 0 }
  0x8d   : > { %s2753_s5 = sand.u32 (!%p3031_p4), 1, %s2488_s28   ;;  %p3032_p8 = scmp.ne.s32.totalorder (!%p3031_p4), %s3027_s20, 0 }
  0x8e   : > { %357 = sbr.rel (%p3031_p4) target bundleno = 2351 (0x92f), region = 52  ;;  %s2756_s6 = sshll.u32 (!%p3031_p4), %s2753_s5, 3 }
  0x8f   : > { %s360_s24 = scalar_lea.sflag (!%p3031_p4), [#allocation3], %s2753_s5  ;;  %s363_s10 = scalar_lea.vmem (!%p3031_p4), [#allocation2], %s2756_s6 }
  0x93   : > { %2459 = dma.done.wait (%p3032_p8), %s360_s24, 128  }
  0x94   : > { %2461 = vsyncadd (%p3032_p8), %s360_s24, 4294967168  ;;  %s368_s2 = sand.u32 1, %s2579_s11   ;;  %s372_s15 = scalar_lea.vmem [#allocation5], %s2756_s6 }
  0x95   : > { %s369_s12 = scalar_lea.sflag [#allocation6], %s368_s2 }
  0x96   : > { %2463 = dma.done.wait (%p3032_p8), %s369_s12, 128  }
  0x97   : > { %2465 = vsyncadd (%p3032_p8), %s369_s12, 4294967168  ;;  %p3033_p7 = scmp.eq.s32.totalorder %s2579_s11, 0 }
  0x99   : > { %2467 = dma.done.wait (%p3033_p7), [#allocation6], 6144   ;;  %p3034_p12 = pmov %p3033_p7 }
  0x9a   : > { %p3035_p6 = pmov %p3033_p7 }
  0x9b   : > { %2469 = vsyncadd (%p3034_p12), [#allocation6], 4294961152 }
  0x9c   : > { %2471 = dma.done.wait (%p3035_p6), [#allocation9], 4096   ;;  %p3036_p2 = pmov %p3035_p6 }
  0x9e   : > { %2473 = vsyncadd (%p3036_p2), [#allocation9], 4294963200  ;;  %p3037_p10 = pmov %p3036_p2 }
  0x9f   : > { %p3038_p11 = pmov %p3036_p2 }
  0xa0   : > { %2475 = dma.done.wait (%p3037_p10), [#allocation12], 2304  }
  0xa1   : > { %2477 = vsyncadd (%p3038_p11), [#allocation12], 4294964992  ;;  %v2509_v0 = vmov 0.0   ;;  %v480_v1 = vld [vmem:[#allocation7 + $0x170] sm:$0xff]  ;;  %v479_v2 = vld [vmem:[#allocation7 + $0x168] sm:$0xff]  ;;  %vm2510_vm0 = vmmov 0   ;;  %v484_v50 = vlaneseq }
  0xa2   : > { %563 = vmatprep.mubr.f32.mxu0 %v2509_v0  ;;  %1919 = vmatprep.subr.mxu1 %v2509_v0  ;;  %v477_v3 = vld [vmem:[#allocation7 + $0x158] sm:$0xff]  ;;  %v476_v4 = vld [vmem:[#allocation7 + $0x150] sm:$0xff]  ;;  %v474_v5 = vld [vmem:[#allocation7 + $0x140] sm:$0xff]  ;;  %v2511_v51 = vmov 1966171168   ;;  %vm985_vm1 = vcmask 64512  }
  0xa3   : > { %499 = vmatprep.subr.mxu0 %v480_v1  ;;  %v473_v6 = vld [vmem:[#allocation7 + $0x138] sm:$0xff]  ;;  %v471_v7 = vld [vmem:[#allocation7 + $0x128] sm:$0xff]  ;;  %v470_v8 = vld [vmem:[#allocation7 + $0x120] sm:$0xff]  ;;  %1951 = vmatprep.mubr.msk.f32.mxu1 %vm2510_vm0, %v2509_v0  ;;  %v650_v52 = vunpack.c.l.s4 %v2511_v51  ;;  %v2813_v53 = vshrl.u32 %v484_v50, 7  ;;  %s1832_s19 = sshll.u32 %s2579_s11, 7  ;;  %s429_s26 = scalar_lea.vmem [#allocation14], %s2756_s6 }
  0xa4   : > { %500 = vmatpush1.msra.mxu0 %v479_v2  ;;  %v468_v9 = vld [vmem:[#allocation7 + $0x110] sm:$0xff]  ;;  %v467_v10 = vld [vmem:[#allocation7 + $0x108] sm:$0xff]  ;;  %v465_v11 = vld [vmem:[#allocation7 + $0xf8] sm:$0xff]  ;;  %s1665_s23 = sshll.u32 %s429_s26, 4  ;;  %s1663_s22 = scalar_lea.hbm %s3009_s8, %s1832_s19  ;;  %s1666_s23 = int_to_ptr.vmem [resolvable:$true] %s1665_s23 }
  0xa5   : > { %501 = vmatprep.subr.mxu0 %v477_v3  ;;  %v464_v12 = vld [vmem:[#allocation7 + $0xf0] sm:$0xff]  ;;  %v462_v13 = vld [vmem:[#allocation7 + $0xe0] sm:$0xff]  ;;  %v461_v14 = vld [vmem:[#allocation7 + $0xd8] sm:$0xff]  ;;  %v651_v54 = vunpack.c.0.s8 %v650_v52  ;;  %v490_v55 = vsub.s32 1, %v2813_v53  ;;  %v2817_v56 = vsub.s32 0, %v2813_v53  ;;  %s1652_s9 = scalar_lea.sflag [#allocation4], %s2753_s5 }
  0xa6   : > { %502 = vmatpush1.msra.mxu0 %v476_v4  ;;  %v481_v15 = vld [vmem:[#allocation7 + $0x178] sm:$0xff]  ;;  %v478_v16 = vld [vmem:[#allocation7 + $0x160] sm:$0xff]  ;;  %v459_v17 = vld [vmem:[#allocation7 + $0xc8] sm:$0xff]  ;;  %s2416_s13 = scalar_lea.vmem %s1666_s23, 128  ;;  %p3039_p13 = scmp.ne.s32.totalorder %s3028_s25, 0 }
  0xa7   : > { %503 = vmatprep.subr.mxu0 %v474_v5  ;;  %1920 = vmatpush3.msra.mxu1 %v481_v15  ;;  %v458_v18 = vld [vmem:[#allocation7 + $0xc0] sm:$0xff]  ;;  %v475_v19 = vld [vmem:[#allocation7 + $0x148] sm:$0xff]  ;;  %v456_v20 = vld [vmem:[#allocation7 + $0xb0] sm:$0xff]  ;;  %v654_v58 = vsub.s32 %v651_v54, %v2813_v53  ;;  %p2417_p0 = scmp.ne.s32.totalorder %s1666_s23, %s2416_s13  ;;  %s2512_s17 = smov [#allocation14]  }
  0xa8   : > { %504 = vmatpush1.msra.mxu0 %v473_v6  ;;  %1921 = vmatprep.subr.mxu1 %v2509_v0  ;;  %v455_v21 = vld [vmem:[#allocation7 + $0xa8] sm:$0xff]  ;;  %v472_v22 = vld [vmem:[#allocation7 + $0x130] sm:$0xff]  ;;  %v453_v23 = vld [vmem:[#allocation7 + $0x98] sm:$0xff]  ;;  %s2420_s24 = sshll.u32 %s2512_s17, 4  ;;  %s2421_s24 = int_to_ptr.vmem [resolvable:$false] %s2420_s24 }
  0xa9   : > { %505 = vmatprep.subr.mxu0 %v471_v7  ;;  %1922 = vmatpush3.msra.mxu1 %v478_v16  ;;  %v452_v24 = vld [vmem:[#allocation7 + $0x90] sm:$0xff]  ;;  %v469_v25 = vld [vmem:[#allocation7 + $0x118] sm:$0xff]  ;;  %v450_v26 = vld [vmem:[#allocation7 + $0x80] sm:$0xff]  ;;  %p2418_p5 = pnand %p2417_p0, %p3039_p13  ;;  %s2422_s11 = scalar_lea.vmem %s2421_s24, 256 }
  0xaa   : > { %506 = vmatpush1.msra.mxu0 %v470_v8  ;;  %1923 = vmatprep.subr.mxu1 %v2509_v0  ;;  %v449_v27 = vld [vmem:[#allocation7 + $0x78] sm:$0xff]  ;;  %v466_v28 = vld [vmem:[#allocation7 + $0x100] sm:$0xff]  ;;  %v447_v29 = vld [vmem:[#allocation7 + $0x68] sm:$0xff]  ;;  %p2423_p1 = scmp.lt.s32.totalorder %s1666_s23, %s2421_s24  ;;  %p2424_p3 = scmp.lt.s32.totalorder %s2422_s11, %s2416_s13 }
  0xab   : > { %507 = vmatprep.subr.mxu0 %v468_v9  ;;  %1924 = vmatpush3.msra.mxu1 %v475_v19  ;;  %v446_v30 = vld [vmem:[#allocation7 + $0x60] sm:$0xff]  ;;  %v463_v31 = vld [vmem:[#allocation7 + $0xe8] sm:$0xff]  ;;  %v444_v32 = vld [vmem:[#allocation7 + $0x50] sm:$0xff]  ;;  %p2419_p9 = pneg %p2418_p5 }
  0xac   : > { %508 = vmatpush1.msra.mxu0 %v467_v10  ;;  %1925 = vmatprep.subr.mxu1 %v2509_v0  ;;  %v443_v33 = vld [vmem:[#allocation7 + $0x48] sm:$0xff]  ;;  %v460_v34 = vld [vmem:[#allocation7 + $0xd0] sm:$0xff]  ;;  %v441_v35 = vld [vmem:[#allocation7 + $0x38] sm:$0xff]  ;;  %p2425_p4 = por %p2424_p3, %p2423_p1 }
  0xad   : > { %509 = vmatprep.subr.mxu0 %v465_v11  ;;  %1926 = vmatpush3.msra.mxu1 %v472_v22  ;;  %v440_v36 = vld [vmem:[#allocation7 + $0x30] sm:$0xff]  ;;  %v457_v37 = vld [vmem:[#allocation7 + $0xb8] sm:$0xff]  ;;  %v438_v38 = vld [vmem:[#allocation7 + $0x20] sm:$0xff] }
  0xae   : > { %510 = vmatpush1.msra.mxu0 %v464_v12  ;;  %1927 = vmatprep.subr.mxu1 %v2509_v0  ;;  %v437_v39 = vld [vmem:[#allocation7 + $0x18] sm:$0xff]  ;;  %v454_v40 = vld [vmem:[#allocation7 + $0xa0] sm:$0xff]  ;;  %v435_v41 = vld [vmem:[#allocation7 + $0x8] sm:$0xff]  ;;  %p2426_p8 = pnand %p2425_p4, %p2419_p9 }
  0xaf   : > { %511 = vmatprep.subr.mxu0 %v462_v13  ;;  %1928 = vmatpush3.msra.mxu1 %v469_v25  ;;  %v434_v42 = vld [vmem:[#allocation7] sm:$0xff]  ;;  %v451_v43 = vld [vmem:[#allocation7 + $0x88] sm:$0xff]  ;;  %v448_v45 = vld [vmem:[#allocation7 + $0x70] sm:$0xff] }
  0xb0   : > { %512 = vmatpush1.msra.mxu0 %v461_v14  ;;  %1929 = vmatprep.subr.mxu1 %v2509_v0  ;;  %v2795_v44 = vld [vmem:[%s363_s10] sm:$0xff]  ;;  %v445_v46 = vld [vmem:[#allocation7 + $0x58] sm:$0xff]  ;;  %v436_v49 = vld [vmem:[#allocation7 + $0x10] sm:$0xff] }
  0xb1   : > { %513 = vmatprep.subr.mxu0 %v459_v17  ;;  %1930 = vmatpush3.msra.mxu1 %v466_v28  ;;  %v442_v47 = vld [vmem:[#allocation7 + $0x40] sm:$0xff]  ;;  %v439_v48 = vld [vmem:[#allocation7 + $0x28] sm:$0xff] }
  0xb2   : > { %514 = vmatpush1.msra.mxu0 %v458_v18  ;;  %1931 = vmatprep.subr.mxu1 %v2509_v0  ;;  %v482_v57 = vld [vmem:[%s3004_s3] sm:$0x7]  ;;  %v1826_v59 = vld.sshfl [vmem:[#allocation13 + $0x8] sm:$0x33 pattern:$0x75316420] }
  0xb3   : > { %515 = vmatprep.subr.mxu0 %v456_v20  ;;  %1932 = vmatpush3.msra.mxu1 %v463_v31  ;;  %v491_v60 = vrot.slane %v482_v57, %v490_v55  ;;  %v487_v61 = vrot.slane %v482_v57, %v2817_v56  ;;  %v655_v63 = vrot.slane %v1826_v59, %v654_v58  ;;  %v494_v20 = vsub.s32 2, %v2813_v53 }
  0xb4   : > { %516 = vmatpush1.msra.mxu0 %v455_v21  ;;  %1933 = vmatprep.subr.mxu1 %v2509_v0  ;;  %v648_v1 = vcombine.high %v1826_v59, %v1826_v59 }
  0xb5   : > { %517 = vmatprep.subr.mxu0 %v453_v23  ;;  %1934 = vmatpush3.msra.mxu1 %v460_v34  ;;  %v668_v4 = vrot.slane %v655_v63, %v2817_v56  ;;  %v663_v9 = vcombine.high %v655_v63, %v655_v63  ;;  %v495_v21 = vrot.slane %v482_v57, %v494_v20 }
  0xb6   : > { %518 = vmatpush1.msra.mxu0 %v452_v24  ;;  %1935 = vmatprep.subr.mxu1 %v2509_v0  ;;  %v662_v7 = vrot.slane %v648_v1, %v654_v58 }
  0xb7   : > { %519 = vmatprep.subr.mxu0 %v450_v26  ;;  %1936 = vmatpush3.msra.mxu1 %v457_v37  ;;  %v2835_v12 = vrot.slane %v663_v9, %v2817_v56  ;;  %v1340_v9 = vld [vmem:[#allocation8 + $0x78] sm:$0xff] }
  0xb8   : > { %520 = vmatpush1.msra.mxu0 %v449_v27  ;;  %1937 = vmatprep.subr.mxu1 %v2509_v0  ;;  %v2828_v8 = vrot.slane %v662_v7, %v2817_v56  ;;  %v664_v13 = vcombine.high %v662_v7, %v662_v7  ;;  %v431_v27 = vld [vmem:[%s372_s15] sm:$0xff] }
  0xb9   : > { %521 = vmatprep.subr.mxu0 %v447_v29  ;;  %1938 = vmatpush3.msra.mxu1 %v454_v40 }
  0xba   : > { %522 = vmatpush1.msra.mxu0 %v446_v30  ;;  %1939 = vmatprep.subr.mxu1 %v2509_v0  ;;  %v2843_v16 = vrot.slane %v664_v13, %v2817_v56  ;;  %v1337_v13 = vld [vmem:[#allocation8 + $0x60] sm:$0xff] }
  0xbb   : > { %523 = vmatprep.subr.mxu0 %v444_v32  ;;  %1940 = vmatpush3.msra.mxu1 %v451_v43 }
  0xbc   : > { %524 = vmatpush1.msra.mxu0 %v443_v33  ;;  %1941 = vmatprep.subr.mxu1 %v2509_v0 }
  0xbd   : > { %525 = vmatprep.subr.mxu0 %v441_v35  ;;  %1942 = vmatpush3.msra.mxu1 %v448_v45 }
  0xbe   : > { %526 = vmatpush1.msra.mxu0 %v440_v36  ;;  %1943 = vmatprep.subr.mxu1 %v2509_v0 }
  0xbf   : > { %527 = vmatprep.subr.mxu0 %v438_v38  ;;  %1944 = vmatpush3.msra.mxu1 %v445_v46 }
  0xc0   : > { %528 = vmatpush1.msra.mxu0 %v437_v39  ;;  %1945 = vmatprep.subr.mxu1 %v2509_v0 }
  0xc1   : > { %529 = vmatprep.subr.mxu0 %v435_v41  ;;  %1946 = vmatpush3.msra.mxu1 %v442_v47 }
  0xc2   : > { %530 = vmatpush1.msra.mxu0 %v434_v42  ;;  %1947 = vmatprep.subr.mxu1 %v2509_v0 }
  0xc3   : > { %564 = vmatmul.mubr.f32.vlgmr.msra.gmra.mxu0 %v2795_v44  ;;  %1994 = vmatprep.subr.mxu0 %v2509_v0 }
  0xc4   : > { %1948 = vmatpush3.msra.mxu1 %v439_v48  ;;  %2026 = vmatprep.mubr.msk.f32.mxu0 %vm2510_vm0, %v2509_v0 }
  0xc5   : > { %1949 = vmatprep.subr.mxu1 %v2509_v0  ;;  %1995 = vmatpush3.msra.mxu0 %v1340_v9  ;;  %v1452_v9 = vld [vmem:[#allocation10 + $0x50] sm:$0xff] }
  0xc6   : > { %1950 = vmatpush3.msra.mxu1 %v436_v49  ;;  %1996 = vmatprep.subr.mxu0 %v2509_v0 }
  0xc7   : > { %1952 = vmatmul.mubr.f32.vlgmr.msra.gmra.mxu1 %v2795_v44  ;;  %1954 = vmatprep.subr.mxu1 %v2509_v0 }
  0xc8   : > { %1956 = vmatprep.mubr.msk.f32.mxu1 %vm2510_vm0, %v2509_v0 }
 0x183   : > { %v565_v62 = vpop.f32.mrf.mxu0 }
 0x184   : > { %v566_v5 = vadd.f32 %v565_v62, %v487_v61 }
 0x185   : > { %v567_v2 = vpop.f32.mrf.mxu0 }
 0x186   : > { %v568_v3 = vadd.f32 %v567_v2, %v491_v60  ;;  %v685_v10 = vmul.f32 %v668_v4, %v566_v5  ;;  %v686_v14 = vmul.f32 %v2828_v8, %v566_v5  ;;  %v687_v17 = vmul.f32 %v2835_v12, %v566_v5 }
 0x187   : > { %v688_v19 = vmul.f32 %v2843_v16, %v566_v5  ;;  %v636_v22 = vpop.f32.mrf.mxu1 }
 0x188   : > { %v689_v6 = vmul.f32 %v668_v4, %v568_v3  ;;  %v690_v11 = vmul.f32 %v2828_v8, %v568_v3  ;;  %v691_v15 = vmul.f32 %v2835_v12, %v568_v3  ;;  %v692_v18 = vmul.f32 %v2843_v16, %v568_v3 }
 0x189   : > { %v2857_v23 = vadd.f32 %v636_v22, %v495_v21  ;;  %v1953_v24 = vpop.f32.mrf.mxu1 }
 0x18a   : > { %1955 = vmatpush3.xpose.msra.mxu1 %v689_v6 }
 0x18b   : > { %1959 = vmatprep.subr.mxu1 %v2509_v0  ;;  %v693_v25 = vmul.f32 %v668_v4, %v2857_v23 }
 0x18d   : > { %1957 = vmatmul.mubr.f32.vlgmr.msra.gmra.mxu1 %v685_v10  ;;  %v1339_v10 = vld [vmem:[#allocation8 + $0x70] sm:$0xff] }
 0x18e   : > { %1960 = vmatpush3.xpose.msra.mxu1 %v690_v11  ;;  %1961 = vmatprep.mubr.msk.f32.mxu1 %vm2510_vm0, %v2509_v0  ;;  %v1338_v11 = vld [vmem:[#allocation8 + $0x68] sm:$0xff] }
 0x18f   : > { %1964 = vmatprep.subr.mxu1 %v2509_v0  ;;  %1997 = vmatpush3.msra.mxu0 %v1339_v10  ;;  %v1451_v10 = vld [vmem:[#allocation10 + $0x48] sm:$0xff] }
 0x190   : > { %1998 = vmatprep.subr.mxu0 %v2509_v0 }
 0x191   : > { %1962 = vmatmul.mubr.f32.vlgmr.msra.gmra.mxu1 %v686_v14  ;;  %1999 = vmatpush3.msra.mxu0 %v1338_v11  ;;  %v1336_v14 = vld [vmem:[#allocation8 + $0x58] sm:$0xff]  ;;  %v1450_v11 = vld [vmem:[#allocation10 + $0x40] sm:$0xff] }
 0x192   : > { %1965 = vmatpush3.xpose.msra.mxu1 %v691_v15  ;;  %1966 = vmatprep.mubr.msk.f32.mxu1 %vm2510_vm0, %v2509_v0  ;;  %v1335_v15 = vld [vmem:[#allocation8 + $0x50] sm:$0xff] }
 0x193   : > { %1969 = vmatprep.subr.mxu1 %v2509_v0  ;;  %2000 = vmatprep.subr.mxu0 %v2509_v0 }
 0x194   : > { %2001 = vmatpush3.msra.mxu0 %v1337_v13  ;;  %v1449_v13 = vld [vmem:[#allocation10 + $0x38] sm:$0xff] }
 0x195   : > { %1967 = vmatmul.mubr.f32.vlgmr.msra.gmra.mxu1 %v687_v17  ;;  %2002 = vmatprep.subr.mxu0 %v2509_v0  ;;  %v1334_v17 = vld [vmem:[#allocation8 + $0x48] sm:$0xff] }
 0x196   : > { %1970 = vmatpush3.xpose.msra.mxu1 %v692_v18  ;;  %1971 = vmatprep.mubr.msk.f32.mxu1 %vm2510_vm0, %v2509_v0  ;;  %v1333_v18 = vld [vmem:[#allocation8 + $0x40] sm:$0xff] }
 0x197   : > { %1974 = vmatprep.subr.mxu1 %v2509_v0  ;;  %2003 = vmatpush3.msra.mxu0 %v1336_v14  ;;  %v1448_v14 = vld [vmem:[#allocation10 + $0x30] sm:$0xff] }
 0x198   : > { %2004 = vmatprep.subr.mxu0 %v2509_v0 }
 0x199   : > { %1972 = vmatmul.mubr.f32.vlgmr.msra.gmra.mxu1 %v688_v19  ;;  %2005 = vmatpush3.msra.mxu0 %v1335_v15  ;;  %v1447_v15 = vld [vmem:[#allocation10 + $0x28] sm:$0xff] }
 0x19a   : > { %1976 = vmatprep.mubr.msk.f32.mxu1 %vm2510_vm0, %v2509_v0  ;;  %1975 = vmatpush3.msra.mxu1 %v693_v25 }
 0x19b   : > { %1979 = vmatprep.subr.mxu1 %v2509_v0  ;;  %2006 = vmatprep.subr.mxu0 %v2509_v0 }
 0x19c   : > { %2007 = vmatpush3.msra.mxu0 %v1334_v17  ;;  %v1446_v17 = vld [vmem:[#allocation10 + $0x20] sm:$0xff] }
 0x19d   : > { %2008 = vmatprep.subr.mxu0 %v2509_v0 }
 0x19e   : > { %2009 = vmatpush3.msra.mxu0 %v1333_v18  ;;  %v1445_v18 = vld [vmem:[#allocation10 + $0x18] sm:$0xff] }
 0x19f   : > { %2010 = vmatprep.subr.mxu0 %v2509_v0 }
 0x24d   : > { %v763_v26 = vpop.f32.mrf.mxu1 }
 0x24e   : > { %v977_v28 = vmul.f32 0.35355338, %v763_v26 }
 0x24f   : > { %v1958_v29 = vpop.f32.mrf.mxu1 }
 0x250   : > { %v981_v30 = vadd.f32 %v977_v28, %v431_v27 }
 0x251   : > { %v833_v31 = vpop.f32.mrf.mxu1 }
 0x252   : > { %v978_v32 = vmul.f32 0.35355338, %v833_v31  ;;  %v986_v33 = vsel %vm985_vm1, %v981_v30, -inf }
 0x253   : > { %987 = vmax.xlane.f32.xlu0 %v986_v33  ;;  %v1963_v34 = vpop.f32.mrf.mxu1 }
 0x254   : > { %v982_v35 = vadd.f32 %v978_v32, %v431_v27  ;;  %v696_v32 = vmul.f32 %v2843_v16, %v2857_v23  ;;  %v1332_v34 = vld [vmem:[#allocation8 + $0x38] sm:$0xff]  ;;  %v1331_v16 = vld [vmem:[#allocation8 + $0x30] sm:$0xff] }
 0x255   : > { %v903_v36 = vpop.f32.mrf.mxu1  ;;  %2011 = vmatpush3.msra.mxu0 %v1332_v34 }
 0x256   : > { %v979_v37 = vmul.f32 0.35355338, %v903_v36  ;;  %v989_v38 = vsel %vm985_vm1, %v982_v35, -inf  ;;  %2012 = vmatprep.subr.mxu0 %v2509_v0  ;;  %v1328_v36 = vld [vmem:[#allocation8 + $0x18] sm:$0xff] }
 0x257   : > { %990 = vmax.xlane.f32.xlu0 %v989_v38  ;;  %v1968_v39 = vpop.f32.mrf.mxu1  ;;  %2013 = vmatpush3.msra.mxu0 %v1331_v16  ;;  %v1326_v38 = vld [vmem:[#allocation8 + $0x8] sm:$0xff]  ;;  %v1548_v16 = vld [vmem:[#allocation11 + $0x58] sm:$0xff] }
 0x258   : > { %v983_v40 = vadd.f32 %v979_v37, %v431_v27  ;;  %2014 = vmatprep.subr.mxu0 %v2509_v0  ;;  %v1327_v37 = vld [vmem:[#allocation8 + $0x10] sm:$0xff]  ;;  %v1325_v39 = vld [vmem:[#allocation8] sm:$0xff] }
 0x259   : > { %v973_v41 = vpop.f32.mrf.mxu1 }
 0x25a   : > { %v980_v42 = vmul.f32 0.35355338, %v973_v41  ;;  %v992_v43 = vsel %vm985_vm1, %v983_v40, -inf }
 0x25b   : > { %993 = vmax.xlane.f32.xlu1 %v992_v43  ;;  %v1973_v45 = vpop.f32.mrf.mxu1 }
 0x25c   : > { %v984_v46 = vadd.f32 %v980_v42, %v431_v27  ;;  %v694_v27 = vmul.f32 %v2828_v8, %v2857_v23 }
 0x25e   : > { %v995_v47 = vsel %vm985_vm1, %v984_v46, -inf }
 0x25f   : > { %996 = vmax.xlane.f32.xlu1 %v995_v47 }
 0x2dc   : > { %v988_v48 = vpop.xlane.xlu0 %987 }
 0x2dd   : > { %v998_v49 = vsub.f32 %v981_v30, %v988_v48  ;;  %v695_v30 = vmul.f32 %v2835_v12, %v2857_v23  ;;  %v1330_v23 = vld [vmem:[#allocation8 + $0x28] sm:$0xff] }
 0x2de   : > { %2015 = vmatpush3.msra.mxu0 %v1330_v23  ;;  %v1547_v23 = vld [vmem:[#allocation11 + $0x50] sm:$0xff] }
 0x2df   : > { %v1002_v50 = vmul.f32 1.442695, %v998_v49  ;;  %2016 = vmatprep.subr.mxu0 %v2509_v0 }
 0x2e0   : > { %v991_v51 = vpop.xlane.xlu0 %990 }
 0x2e1   : > { %2208 = vpow2.f32 %v1002_v50  ;;  %v999_v52 = vsub.f32 %v982_v35, %v991_v51  ;;  %v1329_v35 = vld [vmem:[#allocation8 + $0x20] sm:$0xff] }
 0x2e2   : > { %2017 = vmatpush3.msra.mxu0 %v1329_v35  ;;  %v1546_v35 = vld [vmem:[#allocation11 + $0x48] sm:$0xff] }
 0x2e3   : > { %v1004_v54 = vmul.f32 1.442695, %v999_v52  ;;  %2018 = vmatprep.subr.mxu0 %v2509_v0  ;;  %v2910_v52 = vld [vmem:[#allocation13] sm:$0xff] }
 0x2e4   : > { %v994_v57 = vpop.xlane.xlu1 %993  ;;  %2019 = vmatpush3.msra.mxu0 %v1328_v36  ;;  %v1543_v36 = vld [vmem:[#allocation11 + $0x30] sm:$0xff] }
 0x2e5   : > { %2210 = vpow2.f32 %v1004_v54  ;;  %v1000_v58 = vsub.f32 %v983_v40, %v994_v57  ;;  %2020 = vmatprep.subr.mxu0 %v2509_v0  ;;  %v1344_v54 = vrot.slane %v2910_v52, %v2817_v56  ;;  %v1422_v56 = vsub.s32 7, %v2813_v53 }
 0x2e6   : > { %2021 = vmatpush3.msra.mxu0 %v1327_v37  ;;  %v1542_v37 = vld [vmem:[#allocation11 + $0x28] sm:$0xff] }
 0x2e7   : > { %v1006_v59 = vmul.f32 1.442695, %v1000_v58  ;;  %2022 = vmatprep.subr.mxu0 %v2509_v0 }
 0x2e8   : > { %v997_v60 = vpop.xlane.xlu1 %996  ;;  %2023 = vmatpush3.msra.mxu0 %v1326_v38  ;;  %v1541_v38 = vld [vmem:[#allocation11 + $0x20] sm:$0xff] }
 0x2e9   : > { %2212 = vpow2.f32 %v1006_v59  ;;  %v1001_v61 = vsub.f32 %v984_v46, %v997_v60  ;;  %2024 = vmatprep.subr.mxu0 %v2509_v0 }
 0x2ea   : > { %2025 = vmatpush3.msra.mxu0 %v1325_v39  ;;  %v1540_v39 = vld [vmem:[#allocation11 + $0x18] sm:$0xff] }
 0x2eb   : > { %v1008_v62 = vmul.f32 1.442695, %v1001_v61  ;;  %2064 = vmatprep.subr.mxu0 %v2509_v0  ;;  %v1457_v61 = vld [vmem:[#allocation10 + $0x78] sm:$0xff] }
 0x2ed   : > { %2214 = vpow2.f32 %v1008_v62  ;;  %v1456_v62 = vld [vmem:[#allocation10 + $0x70] sm:$0xff] }
 0x2ee   : > { %v2209_v63 = vpop.eup %2208 }
 0x2ef   : > { %v1010_v1 = vsel %vm985_vm1, %v2209_v63, 0.0 }
 0x2f0   : > { %1011 = vadd.xlane.f32.xlu0 %v1010_v1  ;;  %v1454_v1 = vld [vmem:[#allocation10 + $0x60] sm:$0xff] }
 0x2f2   : > { %v2211_v2 = vpop.eup %2210 }
 0x2f3   : > { %v1013_v3 = vsel %vm985_vm1, %v2211_v2, 0.0 }
 0x2f4   : > { %1014 = vadd.xlane.f32.xlu1 %v1013_v3  ;;  %v2921_v3 = vrot.slane %v2910_v52, %v1422_v56 }
 0x2f6   : > { %v2213_v4 = vpop.eup %2212 }
 0x2f7   : > { %v1016_v5 = vsel %vm985_vm1, %v2213_v4, 0.0 }
 0x2f8   : > { %1017 = vadd.xlane.f32.xlu0 %v1016_v5 }
 0x2fa   : > { %v2215_v6 = vpop.eup %2214 }
 0x2fb   : > { %v1019_v7 = vsel %vm985_vm1, %v2215_v6, 0.0 }
 0x2fc   : > { %1020 = vadd.xlane.f32.xlu1 %v1019_v7  ;;  %v1453_v7 = vld [vmem:[#allocation10 + $0x58] sm:$0xff] }
 0x379   : > { %v1012_v19 = vpop.xlane.xlu0 %1011 }
 0x37a   : > { %2216 = vrcp.f32 %v1012_v19  ;;  %v1444_v19 = vld [vmem:[#allocation10 + $0x10] sm:$0xff] }
 0x37d   : > { %v1015_v21 = vpop.xlane.xlu1 %1014 }
 0x37e   : > { %2218 = vrcp.f32 %v1015_v21  ;;  %v1443_v21 = vld [vmem:[#allocation10 + $0x8] sm:$0xff] }
 0x381   : > { %v1018_v22 = vpop.xlane.xlu0 %1017 }
 0x382   : > { %2220 = vrcp.f32 %v1018_v22  ;;  %v1442_v22 = vld [vmem:[#allocation10] sm:$0xff] }
 0x385   : > { %v1021_v24 = vpop.xlane.xlu1 %1020 }
 0x386   : > { %2222 = vrcp.f32 %v1021_v24  ;;  %v1552_v24 = vld [vmem:[#allocation11 + $0x78] sm:$0xff] }
 0x387   : > { %v2217_v25 = vpop.eup %2216 }
 0x388   : > { %v1026_v26 = vmul.f32 %v2217_v25, %v2209_v63  ;;  %v1455_v63 = vld [vmem:[#allocation10 + $0x68] sm:$0xff]  ;;  %v1551_v25 = vld [vmem:[#allocation11 + $0x70] sm:$0xff] }
 0x38a   : > { %1977 = vmatmul.mubr.msk.f32.vlgmr.msra.gmra.mxu1 %vm985_vm1, %v1026_v26  ;;  %v1550_v26 = vld [vmem:[#allocation11 + $0x68] sm:$0xff] }
 0x38b   : > { %v2219_v28 = vpop.eup %2218  ;;  %1980 = vmatpush3.msra.mxu1 %v694_v27  ;;  %1981 = vmatprep.mubr.msk.f32.mxu1 %vm2510_vm0, %v2509_v0  ;;  %v1549_v27 = vld [vmem:[#allocation11 + $0x60] sm:$0xff] }
 0x38c   : > { %1984 = vmatprep.subr.mxu1 %v2509_v0  ;;  %v1027_v29 = vmul.f32 %v2219_v28, %v2211_v2 }
 0x38e   : > { %1982 = vmatmul.mubr.msk.f32.vlgmr.msra.gmra.mxu1 %vm985_vm1, %v1027_v29 }
 0x38f   : > { %v2221_v31 = vpop.eup %2220  ;;  %1985 = vmatpush3.msra.mxu1 %v695_v30  ;;  %1986 = vmatprep.mubr.msk.f32.mxu1 %vm2510_vm0, %v2509_v0 }
 0x390   : > { %1989 = vmatprep.subr.mxu1 %v2509_v0  ;;  %v1028_v8 = vmul.f32 %v2221_v31, %v2213_v4  ;;  %v1435_v31 = vrot.slane %v2910_v52, %v490_v55  ;;  %v1545_v55 = vld [vmem:[#allocation11 + $0x40] sm:$0xff] }
 0x392   : > { %1987 = vmatmul.mubr.msk.f32.vlgmr.msra.gmra.mxu1 %vm985_vm1, %v1028_v8 }
 0x393   : > { %v2223_v33 = vpop.eup %2222  ;;  %1990 = vmatpush3.msra.mxu1 %v696_v32  ;;  %1991 = vmatprep.mubr.msk.f32.mxu1 %vm2510_vm0, %v2509_v0  ;;  %v1440_v32 = vrot.slane %v2910_v52, %v494_v20  ;;  %v1544_v20 = vld [vmem:[#allocation11 + $0x38] sm:$0xff] }
 0x394   : > { %v1029_v12 = vmul.f32 %v2223_v33, %v2215_v6  ;;  %2029 = vmatprep.subr.mxu1 %v2509_v0 }
 0x396   : > { %1992 = vmatmul.mubr.msk.f32.vlgmr.msra.gmra.mxu1 %vm985_vm1, %v1029_v12 }
 0x397   : > { %2061 = vmatprep.mubr.msk.f32.mxu1 %vm2510_vm0, %v2509_v0  ;;  %2030 = vmatpush3.msra.mxu1 %v1457_v61 }
 0x398   : > { %2031 = vmatprep.subr.mxu1 %v2509_v0 }
 0x399   : > { %2032 = vmatpush3.msra.mxu1 %v1456_v62 }
 0x39a   : > { %2033 = vmatprep.subr.mxu1 %v2509_v0 }
 0x39b   : > { %2034 = vmatpush3.msra.mxu1 %v1455_v63 }
 0x39c   : > { %2035 = vmatprep.subr.mxu1 %v2509_v0 }
 0x39d   : > { %2036 = vmatpush3.msra.mxu1 %v1454_v1 }
 0x39e   : > { %2037 = vmatprep.subr.mxu1 %v2509_v0 }
 0x39f   : > { %2038 = vmatpush3.msra.mxu1 %v1453_v7  ;;  %v1642_v7 = vsub.s32 5, %v2813_v53 }
 0x3a0   : > { %2039 = vmatprep.subr.mxu1 %v2509_v0 }
 0x3a1   : > { %2040 = vmatpush3.msra.mxu1 %v1452_v9  ;;  %v1647_v9 = vsub.s32 6, %v2813_v53 }
 0x3a2   : > { %2041 = vmatprep.subr.mxu1 %v2509_v0 }
 0x3a3   : > { %2042 = vmatpush3.msra.mxu1 %v1451_v10  ;;  %v1643_v10 = vrot.slane %v2910_v52, %v1642_v7 }
 0x3a4   : > { %2043 = vmatprep.subr.mxu1 %v2509_v0 }
 0x3a5   : > { %2044 = vmatpush3.msra.mxu1 %v1450_v11 }
 0x3a6   : > { %2045 = vmatprep.subr.mxu1 %v2509_v0 }
 0x3a7   : > { %2046 = vmatpush3.msra.mxu1 %v1449_v13 }
 0x3a8   : > { %2047 = vmatprep.subr.mxu1 %v2509_v0 }
 0x3a9   : > { %2048 = vmatpush3.msra.mxu1 %v1448_v14  ;;  %v1648_v14 = vrot.slane %v2910_v52, %v1647_v9 }
 0x3aa   : > { %2049 = vmatprep.subr.mxu1 %v2509_v0 }
 0x3ab   : > { %2050 = vmatpush3.msra.mxu1 %v1447_v15 }
 0x3ac   : > { %2051 = vmatprep.subr.mxu1 %v2509_v0 }
 0x3ad   : > { %2052 = vmatpush3.msra.mxu1 %v1446_v17 }
 0x3ae   : > { %2053 = vmatprep.subr.mxu1 %v2509_v0 }
 0x3af   : > { %2054 = vmatpush3.msra.mxu1 %v1445_v18 }
 0x3b0   : > { %2055 = vmatprep.subr.mxu1 %v2509_v0 }
 0x3b1   : > { %2056 = vmatpush3.msra.mxu1 %v1444_v19 }
 0x3b2   : > { %2057 = vmatprep.subr.mxu1 %v2509_v0 }
 0x3b3   : > { %2058 = vmatpush3.msra.mxu1 %v1443_v21 }
 0x3b4   : > { %2059 = vmatprep.subr.mxu1 %v2509_v0 }
 0x3b5   : > { %2060 = vmatpush3.msra.mxu1 %v1442_v22 }
 0x44a   : > { %v1099_v40 = vpop.f32.mrf.mxu1 }
 0x44c   : > { %v1978_v41 = vpop.f32.mrf.mxu1 }
 0x44d   : > { %v1538_v41 = vld [vmem:[#allocation11 + $0x8] sm:$0xff] }
 0x44e   : > { %v1172_v42 = vpop.f32.mrf.mxu1 }
 0x44f   : > { %v1322_v46 = vadd.f32 %v1172_v42, %v1099_v40  ;;  %v1539_v40 = vld [vmem:[#allocation11 + $0x10] sm:$0xff]  ;;  %v1537_v42 = vld [vmem:[#allocation11] sm:$0xff] }
 0x450   : > { %v1983_v43 = vpop.f32.mrf.mxu1 }
 0x451   : > { %v1460_v43 = vsub.s32 3, %v2813_v53 }
 0x452   : > { %v1245_v45 = vpop.f32.mrf.mxu1 }
 0x453   : > { %v1323_v48 = vadd.f32 %v1322_v46, %v1245_v45  ;;  %v1461_v45 = vrot.slane %v2910_v52, %v1460_v43 }
 0x454   : > { %v1988_v47 = vpop.f32.mrf.mxu1 }
 0x456   : > { %v1318_v49 = vpop.f32.mrf.mxu1 }
 0x457   : > { %v1324_v50 = vadd.f32 %v1323_v48, %v1318_v49 }
 0x458   : > { %v1993_v51 = vpop.f32.mrf.mxu1 }
 0x459   : > { %2027 = vmatmul.mubr.f32.vlgmr.msra.gmra.mxu0 %v1324_v50 }
 0x45a   : > { %2096 = vmatprep.mubr.msk.f32.mxu0 %vm2510_vm0, %v2509_v0  ;;  %2065 = vmatpush3.msra.mxu0 %v1552_v24 }
 0x45b   : > { %2066 = vmatprep.subr.mxu0 %v2509_v0 }
 0x45c   : > { %2067 = vmatpush3.msra.mxu0 %v1551_v25 }
 0x45d   : > { %2068 = vmatprep.subr.mxu0 %v2509_v0 }
 0x45e   : > { %2069 = vmatpush3.msra.mxu0 %v1550_v26 }
 0x45f   : > { %2070 = vmatprep.subr.mxu0 %v2509_v0 }
 0x460   : > { %2071 = vmatpush3.msra.mxu0 %v1549_v27 }
 0x461   : > { %2072 = vmatprep.subr.mxu0 %v2509_v0 }
 0x462   : > { %2073 = vmatpush3.msra.mxu0 %v1548_v16 }
 0x463   : > { %2074 = vmatprep.subr.mxu0 %v2509_v0 }
 0x464   : > { %2075 = vmatpush3.msra.mxu0 %v1547_v23 }
 0x465   : > { %2076 = vmatprep.subr.mxu0 %v2509_v0 }
 0x466   : > { %2077 = vmatpush3.msra.mxu0 %v1546_v35 }
 0x467   : > { %2078 = vmatprep.subr.mxu0 %v2509_v0 }
 0x468   : > { %2079 = vmatpush3.msra.mxu0 %v1545_v55 }
 0x469   : > { %2080 = vmatprep.subr.mxu0 %v2509_v0 }
 0x46a   : > { %2081 = vmatpush3.msra.mxu0 %v1544_v20 }
 0x46b   : > { %2082 = vmatprep.subr.mxu0 %v2509_v0 }
 0x46c   : > { %2083 = vmatpush3.msra.mxu0 %v1543_v36 }
 0x46d   : > { %2084 = vmatprep.subr.mxu0 %v2509_v0 }
 0x46e   : > { %2085 = vmatpush3.msra.mxu0 %v1542_v37 }
 0x46f   : > { %2086 = vmatprep.subr.mxu0 %v2509_v0 }
 0x470   : > { %2087 = vmatpush3.msra.mxu0 %v1541_v38 }
 0x471   : > { %2088 = vmatprep.subr.mxu0 %v2509_v0 }
 0x472   : > { %2089 = vmatpush3.msra.mxu0 %v1540_v39 }
 0x473   : > { %2090 = vmatprep.subr.mxu0 %v2509_v0 }
 0x474   : > { %2091 = vmatpush3.msra.mxu0 %v1539_v40 }
 0x475   : > { %2092 = vmatprep.subr.mxu0 %v2509_v0 }
 0x476   : > { %2093 = vmatpush3.msra.mxu0 %v1538_v41 }
 0x477   : > { %2094 = vmatprep.subr.mxu0 %v2509_v0 }
 0x478   : > { %2095 = vmatpush3.msra.mxu0 %v1537_v42 }
 0x519   : > { %v1411_v57 = vpop.f32.mrf.mxu0 }
 0x51a   : > { %v1412_v58 = vadd.f32 %v1411_v57, %v1344_v54 }
 0x51b   : > { %v2028_v59 = vpop.f32.mrf.mxu0 }
 0x51c   : > { %v1415_v60 = vadd.f32 %v1412_v58, %v2795_v44  ;;  %v1555_v58 = vsub.s32 4, %v2813_v53 }
 0x51e   : > { %1416 = vadd.xlane.f32.xlu0 %v1415_v60  ;;  %v1556_v59 = vrot.slane %v2910_v52, %v1555_v58 }
 0x5a7   : > { %v1417_v44 = vpop.xlane.xlu0 %1416 }
 0x5a8   : > { %v1418_v2 = vmul.f32 0.03125, %v1417_v44 }
 0x5aa   : > { %v1419_v4 = vsub.f32 %v1415_v60, %v1418_v2 }
 0x5ac   : > { %v1424_v5 = vmul.f32 %v2921_v3, %v1419_v4 }
 0x5ae   : > { %v1425_v6 = vmul.f32 %v1424_v5, %v1424_v5 }
 0x5b0   : > { %1426 = vadd.xlane.f32.xlu1 %v1425_v6 }
 0x639   : > { %v1427_v28 = vpop.xlane.xlu1 %1426 }
 0x63a   : > { %v1428_v29 = vmul.f32 0.03125, %v1427_v28 }
 0x63c   : > { %v1429_v30 = vadd.f32 1e-12, %v1428_v29 }
 0x63e   : > { %2224 = vrsqrt.f32 %v1429_v30 }
 0x64b   : > { %v2225_v8 = vpop.eup %2224 }
 0x64c   : > { %v1431_v33 = vmul.f32 %v2225_v8, %v1424_v5 }
 0x64e   : > { %v1436_v12 = vmul.f32 %v1435_v31, %v1431_v33 }
 0x650   : > { %v1441_v34 = vadd.f32 %v1440_v32, %v1436_v12 }
 0x652   : > { %2062 = vmatmul.mubr.f32.vlgmr.msra.gmra.mxu1 %v1441_v34 }
 0x712   : > { %v1528_v46 = vpop.f32.mrf.mxu1 }
 0x713   : > { %v1529_v47 = vadd.f32 %v1528_v46, %v1461_v45 }
 0x714   : > { %v2063_v48 = vpop.f32.mrf.mxu1 }
 0x715   : > { %v1533_v49 = vmul.f32 0.70710677, %v1529_v47  ;;  %v1532_v51 = vmul.f32 0.5, %v1529_v47 }
 0x717   : > { %2226 = verf.f32 %v1533_v49 }
 0x724   : > { %v2227_v50 = vpop.eup %2226 }
 0x725   : > { %v1535_v54 = vadd.f32 1.0, %v2227_v50 }
 0x727   : > { %v1536_v57 = vmul.f32 %v1535_v54, %v1532_v51 }
 0x729   : > { %2097 = vmatmul.mubr.f32.vlgmr.msra.gmra.mxu0 %v1536_v57 }
 0x7e9   : > { %v1623_v0 = vpop.f32.mrf.mxu0 }
 0x7ea   : > { %v1624_v60 = vadd.f32 %v1623_v0, %v1556_v59 }
 0x7eb   : > { %v2098_v61 = vpop.f32.mrf.mxu0 }
 0x7ec   : > { %v1627_v62 = vadd.f32 %v1624_v60, %v1441_v34 }
 0x7ee   : > { %1628 = vadd.xlane.f32.xlu0 %v1627_v62 }
 0x877   : > { %v1629_v63 = vpop.xlane.xlu0 %1628 }
 0x878   : > { %v1630_v1 = vmul.f32 0.03125, %v1629_v63 }
 0x87a   : > { %v1631_v56 = vsub.f32 %v1627_v62, %v1630_v1 }
 0x87c   : > { %v1632_v44 = vmul.f32 %v1631_v56, %v2921_v3 }
 0x87e   : > { %v1633_v2 = vmul.f32 %v1632_v44, %v1632_v44 }
 0x880   : > { %1634 = vadd.xlane.f32.xlu1 %v1633_v2 }
 0x909   : > { %v1635_v4 = vpop.xlane.xlu1 %1634 }
 0x90a   : > { %v1636_v5 = vmul.f32 0.03125, %v1635_v4 }
 0x90c   : > { %v1637_v6 = vadd.f32 1e-12, %v1636_v5 }
 0x90e   : > { %2228 = vrsqrt.f32 %v1637_v6 }
 0x91b   : > { %v2229_v11 = vpop.eup %2228 }
 0x91c   : > { %v1639_v13 = vmul.f32 %v2229_v11, %v1632_v44 }
 0x91e   : > { %v1644_v3 = vmul.f32 %v1643_v10, %v1639_v13 }
 0x920   : > { %v1649_v15 = vadd.f32 %v1648_v14, %v1644_v3 }
 0x922   : > { %1650 = vst [vmem:[%s429_s26] sm:$0xff] %v1649_v15 }
 0x923   : > { %2429 = shalt.err (!%p2426_p8)
}
 0x924   : > { %s2430_s6 = scalar_lea.hbm %s1663_s22, 128  ;;  %s2434_s2 = scalar_lea.hbm %s3009_s8, 256 }
 0x925   : > { %p2431_p7 = scmp.ne.s32.totalorder %s1663_s22, %s2430_s6  ;;  %p2435_p2 = scmp.lt.s32.totalorder %s1663_s22, %s3009_s8 }
 0x926   : > { %p2436_p10 = scmp.lt.s32.totalorder %s2434_s2, %s2430_s6 }
 0x927   : > { %p2432_p12 = pnand %p2431_p7, %p3039_p13 }
 0x928   : > { %p2437_p11 = por %p2436_p10, %p2435_p2 }
 0x929   : > { %p2433_p6 = pneg %p2432_p12 }
 0x92b   : > { %p2438_p0 = pnand %p2437_p11, %p2433_p6 }
 0x92d   : > { %2441 = shalt.err (!%p2438_p0)
}
 0x92e   : > { %2123 = dma.vmem_to_hbm [thread:$0]  (%p3039_p13), %s1666_s23, 128, %s1663_s22, %s1652_s9  }
 0x92f PF: > { %s1677_s20 = sand.u32 1, %s2484_s27   ;;  %p3040_p5 = scmp.ne.s32.totalorder %s3029_s21, 0 }
 0x930   : > { %p3041_p9 = scmp.ge.s32.totalorder %s2496_s30, 2  ;;  %s1678_s7 = scalar_lea.sflag [#allocation4], %s1677_s20 }
 0x932   : > { %p2149_p1 = pnand %p3041_p9, %p3040_p5 }
 0x934   : > { %p2150_p3 = pneg %p2149_p1 }
 0x936   : > { %2479 = dma.done.wait (%p2150_p3), %s1678_s7, 128  }
 0x937   : > { %2481 = vsyncadd (%p2150_p3), %s1678_s7, 4294967168  ;;  %p26_p4 = scmp.ge.s32.totalorder %s2662_s18, 4   ;;  %s3042_s27 = smov %s2488_s28 }
 0x938   : > { %s3043_s28 = smov %s2492_s29  ;;  %s3044_s29 = smov %s2674_s14 }
 0x939   : > { %s3045_s30 = smov %s2662_s18  ;;  %28 = sbr.rel (!%p26_p4) target bundleno = 15 (0xf), region = 130 }
 0x93e   :  { %1683 = vsyncpa [#allocation3], 1 }
 0x93f   :  { %1685 = vsyncpa [#allocation3 + $0x1], 1 }
 0x940   :  { %1686 = vsyncpa [#allocation6], 1 }
 0x941   :  { %1688 = vsyncpa [#allocation6 + $0x1], 1 }
 0x942   :  { %1689 = vsyncpa [#allocation9], 1 }
 0x943   :  { %1690 = vsyncpa [#allocation12], 1 }
 0x944   :  { %1691 = vsyncpa [#allocation4], 1 }
 0x945   :  { %1693 = vsyncpa [#allocation4 + $0x1], 1 }

</bundles_post_ra>
